<compile_context>
chip_gen: v7x
topology: tpu7x:2x2x1
jax: 0.10.0
libtpu: 0.0.40
codegen_flags: <defaults>
</compile_context>

<pallas_src>
import functools

import jax
import jax.numpy as jnp
from jax.experimental import pallas as pl
from jax.experimental.pallas import tpu as pltpu


def _conv_bn_relu_kernel(x_ref, w_ref, bias_ref, o_ref, xp_ref, *,
                         stride, h, w, ho, wo):
    """One batch element per grid step.

    x_ref   : (1, H, W, Ci)    bf16 unpadded NHWC input block
    w_ref   : (9*Ci, Cop)      bf16 scale-folded conv weights (tap-major), Co padded to 128
    bias_ref: (1, Cop)         f32 folded BN bias
    o_ref   : (1, Ho, Wo, Cop) f32 output block (Cop lane-dense)
    xp_ref  : (H+2, W+2, Ci)   f32 VMEM scratch holding the zero-padded image
    """
    # Fused 'same' zero padding: zero the scratch, then write the interior.
    xp_ref[...] = jnp.zeros_like(xp_ref)
    xp_ref[1:h + 1, 1:w + 1, :] = x_ref[0].astype(xp_ref.dtype)
    xp = xp_ref[...]                                                  # (Hp, Wp, Ci)

    # im2col: 3 sublane (W) shifts, each reused for 3 cheap row (H) offsets.
    cols = []
    for kw in range(3):
        xw = xp[:, kw:kw + (wo - 1) * stride + 1:stride, :]           # (Hp, Wo, Ci)
        for kh in range(3):
            cols.append(xw[kh:kh + (ho - 1) * stride + 1:stride])     # (Ho, Wo, Ci)
    patch = jnp.concatenate(cols, axis=-1).astype(jnp.bfloat16)       # (Ho, Wo, 9*Ci)

    # Single MXU contraction over K = 9*Ci with f32 accumulation.
    acc = jax.lax.dot_general(
        patch, w_ref[...],
        dimension_numbers=(((2,), (0,)), ((), ())),
        preferred_element_type=jnp.float32)                           # (Ho, Wo, Cop)

    # Folded BN bias + ReLU.  Dropout(p=0.0) is the identity.
    y = jnp.maximum(acc + bias_ref[...], 0.0)
    o_ref[0] = y.astype(o_ref.dtype)


def conv_norm_act(x_nchw, weight_oihw, conv_bias, gamma, beta, running_mean,
                  running_var, *, stride=1, eps=1e-5):
    """ConvNormAct forward. x_nchw: (N, Ci, H, W) f32 -> (N, Co, Ho, Wo) f32."""
    n, ci, h, w = x_nchw.shape
    co = weight_oihw.shape[0]
    ho = (h + 2 - 3) // stride + 1
    wo = (w + 2 - 3) // stride + 1
    cop = ((co + 127) // 128) * 128          # lane-dense output channel width

    # Layout glue (NCHW -> NHWC, channels on lanes) + eval-mode BN folding.
    x_nhwc = jnp.transpose(x_nchw, (0, 2, 3, 1)).astype(jnp.bfloat16)

    scale = gamma / jnp.sqrt(running_var + eps)                       # (Co,)
    bias = (conv_bias - running_mean) * scale + beta                  # (Co,)
    w_folded = weight_oihw * scale[:, None, None, None]               # scale folded into W
    # OIHW -> (kw, kh, Ci, Co) -> (9*Ci, Co); tap order must match the kernel's im2col.
    w_mat = jnp.transpose(w_folded, (3, 2, 1, 0)).reshape(9 * ci, co)
    w_mat = jnp.pad(w_mat, ((0, 0), (0, cop - co))).astype(jnp.bfloat16)
    bias_p = jnp.pad(bias, (0, cop - co)).reshape(1, cop).astype(jnp.float32)

    kernel = functools.partial(_conv_bn_relu_kernel, stride=stride,
                               h=h, w=w, ho=ho, wo=wo)

    out_p = pl.pallas_call(
        kernel,
        out_shape=jax.ShapeDtypeStruct((n, ho, wo, cop), jnp.float32),
        grid=(n,),
        in_specs=[
            pl.BlockSpec((1, h, w, ci), lambda b: (b, 0, 0, 0)),
            pl.BlockSpec((9 * ci, cop), lambda b: (0, 0)),
            pl.BlockSpec((1, cop), lambda b: (0, 0)),
        ],
        out_specs=pl.BlockSpec((1, ho, wo, cop), lambda b: (b, 0, 0, 0)),
        scratch_shapes=[pltpu.VMEM((h + 2, w + 2, ci), jnp.float32)],
        compiler_params=pltpu.CompilerParams(
            dimension_semantics=("parallel",)),
    )(x_nhwc, w_mat, bias_p)

    # Drop the channel padding, back to NCHW.
    return jnp.transpose(out_p[..., :co], (0, 3, 1, 2))


def _reference(x, weight, conv_bias, gamma, beta, mean, var, *, stride, eps=1e-5):
    y = jax.lax.conv_general_dilated(
        x, weight, window_strides=(stride, stride), padding=((1, 1), (1, 1)),
        dimension_numbers=("NCHW", "OIHW", "NCHW"))
    y = y + conv_bias[None, :, None, None]
    y = (y - mean[None, :, None, None]) / jnp.sqrt(var + eps)[None, :, None, None]
    y = y * gamma[None, :, None, None] + beta[None, :, None, None]
    return jnp.maximum(y, 0.0)


if __name__ == "__main__":
    key = jax.random.PRNGKey(0)
    k_x, k_w, k_b, k_g, k_be, k_m, k_v = jax.random.split(key, 7)

    N, CIN, COUT, H, W, STRIDE = 2, 4, 8, 16, 16, 1

    x = jax.random.normal(k_x, (N, CIN, H, W), jnp.float32)
    weight = jax.random.normal(k_w, (COUT, CIN, 3, 3), jnp.float32) * 0.1
    conv_bias = jax.random.normal(k_b, (COUT,), jnp.float32) * 0.1
    gamma = 1.0 + 0.1 * jax.random.normal(k_g, (COUT,), jnp.float32)
    beta = 0.1 * jax.random.normal(k_be, (COUT,), jnp.float32)
    running_mean = 0.1 * jax.random.normal(k_m, (COUT,), jnp.float32)
    running_var = jnp.abs(1.0 + 0.1 * jax.random.normal(k_v, (COUT,), jnp.float32))

    out = conv_norm_act(x, weight, conv_bias, gamma, beta, running_mean,
                        running_var, stride=STRIDE)
    out = jax.block_until_ready(out)

    ref = _reference(x, weight, conv_bias, gamma, beta, running_mean,
                     running_var, stride=STRIDE)
    assert out.shape == ref.shape, (out.shape, ref.shape)
    # bf16 matmul inputs (f32 accumulation) -> compare against the f32 reference with
    # bf16-appropriate tolerance.
    assert jnp.allclose(out, ref, atol=6e-2, rtol=6e-2), float(
        jnp.max(jnp.abs(out - ref)))

    print("KERNEL_OK")
</pallas_src>

<mosaic_0001>
module attributes {stable_mosaic.version = 11 : i64} {
  func.func @_conv_bn_relu_kernel(%arg0: i32, %arg1: memref<1x16x16x4xbf16, #tpu.memory_space<vmem>>, %arg2: memref<36x128xbf16, #tpu.memory_space<vmem>>, %arg3: memref<1x128xf32, #tpu.memory_space<vmem>>, %arg4: memref<1x16x16x128xf32, #tpu.memory_space<vmem>>, %arg5: memref<18x18x4xf32, #tpu.memory_space<vmem>>) attributes {dimension_semantics = [#tpu.dimension_semantics<parallel>], iteration_bounds = array<i64: 2>, scalar_prefetch = 0 : i64, scratch_operands = 1 : i64, tpu.core_type = #tpu.core_type<tc>, window_params = [{transform_indices = @transform_0, window_bounds = array<i64: 1, 16, 16, 4>}, {pipeline_mode = #tpu.pipeline_mode<synchronous>, transform_indices = @transform_1, window_bounds = array<i64: 36, 128>}, {pipeline_mode = #tpu.pipeline_mode<synchronous>, transform_indices = @transform_2, window_bounds = array<i64: 1, 128>}, {transform_indices = @transform_3, window_bounds = array<i64: 1, 16, 16, 128>}]} {
    %cst = arith.constant 0.000000e+00 : f32
    %0 = vector.broadcast %cst : f32 to vector<18x18x4xf32>
    %c0 = arith.constant 0 : index
    %c0_0 = arith.constant 0 : index
    %c0_1 = arith.constant 0 : index
    %1 = vector.load %arg5[%c0, %c0_0, %c0_1] : memref<18x18x4xf32, #tpu.memory_space<vmem>>, vector<18x18x4xf32>
    tpu.vector_store %arg5[%c0, %c0_0, %c0_1], %0 {strides = array<i32>} : memref<18x18x4xf32, #tpu.memory_space<vmem>>, vector<18x18x4xf32>,
    %c0_2 = arith.constant 0 : index
    %c0_3 = arith.constant 0 : index
    %c0_4 = arith.constant 0 : index
    %c0_5 = arith.constant 0 : index
    %2 = vector.load %arg1[%c0_2, %c0_3, %c0_4, %c0_5] : memref<1x16x16x4xbf16, #tpu.memory_space<vmem>>, vector<1x16x16x4xbf16>
    %3 = vector.shape_cast %2 : vector<1x16x16x4xbf16> to vector<16x16x4xbf16>
    %4 = arith.extf %3 : vector<16x16x4xbf16> to vector<16x16x4xf32>
    %c1 = arith.constant 1 : index
    %c1_6 = arith.constant 1 : index
    %c0_7 = arith.constant 0 : index
    %5 = vector.load %arg5[%c1, %c1_6, %c0_7] : memref<18x18x4xf32, #tpu.memory_space<vmem>>, vector<16x16x4xf32>
    tpu.vector_store %arg5[%c1, %c1_6, %c0_7], %4 {strides = array<i32>} : memref<18x18x4xf32, #tpu.memory_space<vmem>>, vector<16x16x4xf32>,
    %c0_8 = arith.constant 0 : index
    %c0_9 = arith.constant 0 : index
    %c0_10 = arith.constant 0 : index
    %6 = vector.load %arg5[%c0_8, %c0_9, %c0_10] : memref<18x18x4xf32, #tpu.memory_space<vmem>>, vector<18x18x4xf32>
    %7 = vector.extract_strided_slice %6 {offsets = [0, 0, 0], sizes = [18, 16, 4], strides = [1, 1, 1]} : vector<18x18x4xf32> to vector<18x16x4xf32>
    %8 = vector.extract_strided_slice %7 {offsets = [0, 0, 0], sizes = [16, 16, 4], strides = [1, 1, 1]} : vector<18x16x4xf32> to vector<16x16x4xf32>
    %9 = vector.extract_strided_slice %7 {offsets = [1, 0, 0], sizes = [16, 16, 4], strides = [1, 1, 1]} : vector<18x16x4xf32> to vector<16x16x4xf32>
    %10 = vector.extract_strided_slice %7 {offsets = [2, 0, 0], sizes = [16, 16, 4], strides = [1, 1, 1]} : vector<18x16x4xf32> to vector<16x16x4xf32>
    %11 = vector.extract_strided_slice %6 {offsets = [0, 1, 0], sizes = [18, 16, 4], strides = [1, 1, 1]} : vector<18x18x4xf32> to vector<18x16x4xf32>
    %12 = vector.extract_strided_slice %11 {offsets = [0, 0, 0], sizes = [16, 16, 4], strides = [1, 1, 1]} : vector<18x16x4xf32> to vector<16x16x4xf32>
    %13 = vector.extract_strided_slice %11 {offsets = [1, 0, 0], sizes = [16, 16, 4], strides = [1, 1, 1]} : vector<18x16x4xf32> to vector<16x16x4xf32>
    %14 = vector.extract_strided_slice %11 {offsets = [2, 0, 0], sizes = [16, 16, 4], strides = [1, 1, 1]} : vector<18x16x4xf32> to vector<16x16x4xf32>
    %15 = vector.extract_strided_slice %6 {offsets = [0, 2, 0], sizes = [18, 16, 4], strides = [1, 1, 1]} : vector<18x18x4xf32> to vector<18x16x4xf32>
    %16 = vector.extract_strided_slice %15 {offsets = [0, 0, 0], sizes = [16, 16, 4], strides = [1, 1, 1]} : vector<18x16x4xf32> to vector<16x16x4xf32>
    %17 = vector.extract_strided_slice %15 {offsets = [1, 0, 0], sizes = [16, 16, 4], strides = [1, 1, 1]} : vector<18x16x4xf32> to vector<16x16x4xf32>
    %18 = vector.extract_strided_slice %15 {offsets = [2, 0, 0], sizes = [16, 16, 4], strides = [1, 1, 1]} : vector<18x16x4xf32> to vector<16x16x4xf32>
    %19 = tpu.concatenate %8, %9, %10, %12, %13, %14, %16, %17, %18 in 2 : vector<16x16x4xf32>, vector<16x16x4xf32>, vector<16x16x4xf32>, vector<16x16x4xf32>, vector<16x16x4xf32>, vector<16x16x4xf32>, vector<16x16x4xf32>, vector<16x16x4xf32>, vector<16x16x4xf32> -> vector<16x16x36xf32>
    %20 = arith.truncf %19 : vector<16x16x36xf32> to vector<16x16x36xbf16>
    %c0_11 = arith.constant 0 : index
    %c0_12 = arith.constant 0 : index
    %21 = vector.load %arg2[%c0_11, %c0_12] : memref<36x128xbf16, #tpu.memory_space<vmem>>, vector<36x128xbf16>
    %cst_13 = arith.constant dense<0.000000e+00> : vector<16x16x128xf32>
    %22 = tpu.matmul %20, %21, %cst_13 {dimension_numbers = #tpu.dot_dimension_numbers<[2], [0], [0, 1], [1], [0, 0, 0, 1, 1, 1], [], []>} : vector<16x16x36xbf16>, vector<36x128xbf16>, vector<16x16x128xf32> -> vector<16x16x128xf32>
    %c0_14 = arith.constant 0 : index
    %c0_15 = arith.constant 0 : index
    %23 = vector.load %arg3[%c0_14, %c0_15] : memref<1x128xf32, #tpu.memory_space<vmem>>, vector<1x128xf32>
    %24 = vector.shape_cast %23 : vector<1x128xf32> to vector<1x1x128xf32>
    %25 = vector.broadcast %24 : vector<1x1x128xf32> to vector<16x16x128xf32>
    %26 = arith.addf %22, %25 : vector<16x16x128xf32>
    %cst_16 = arith.constant 0.000000e+00 : f32
    %27 = vector.broadcast %cst_16 : f32 to vector<16x16x128xf32>
    %28 = arith.maximumf %26, %27 : vector<16x16x128xf32>
    %c0_17 = arith.constant 0 : index
    %c0_18 = arith.constant 0 : index
    %c0_19 = arith.constant 0 : index
    %c0_20 = arith.constant 0 : index
    %29 = vector.load %arg4[%c0_17, %c0_18, %c0_19, %c0_20] : memref<1x16x16x128xf32, #tpu.memory_space<vmem>>, vector<1x16x16x128xf32>
    %30 = vector.shape_cast %29 : vector<1x16x16x128xf32> to vector<16x16x128xf32>
    %31 = vector.shape_cast %28 : vector<16x16x128xf32> to vector<1x16x16x128xf32>
    tpu.vector_store %arg4[%c0_17, %c0_18, %c0_19, %c0_20], %31 {strides = array<i32>} : memref<1x16x16x128xf32, #tpu.memory_space<vmem>>, vector<1x16x16x128xf32>,
    return
  }
  func.func @transform_0(%arg0: i32) -> (i32, i32, i32, i32) {
    %c0_i32 = arith.constant 0 : i32
    %c0_i32_0 = arith.constant 0 : i32
    %c0_i32_1 = arith.constant 0 : i32
    %c0_i32_2 = arith.constant 0 : i32
    return %arg0, %c0_i32, %c0_i32_0, %c0_i32_1 : i32, i32, i32, i32
  }
  func.func @transform_1(%arg0: i32) -> (i32, i32) {
    %c0_i32 = arith.constant 0 : i32
    %c0_i32_0 = arith.constant 0 : i32
    %c0_i32_1 = arith.constant 0 : i32
    return %c0_i32, %c0_i32_0 : i32, i32
  }
  func.func @transform_2(%arg0: i32) -> (i32, i32) {
    %c0_i32 = arith.constant 0 : i32
    %c0_i32_0 = arith.constant 0 : i32
    %c0_i32_1 = arith.constant 0 : i32
    return %c0_i32, %c0_i32_0 : i32, i32
  }
  func.func @transform_3(%arg0: i32) -> (i32, i32, i32, i32) {
    %c0_i32 = arith.constant 0 : i32
    %c0_i32_0 = arith.constant 0 : i32
    %c0_i32_1 = arith.constant 0 : i32
    %c0_i32_2 = arith.constant 0 : i32
    return %arg0, %c0_i32, %c0_i32_0, %c0_i32_1 : i32, i32, i32, i32
  }
}

</mosaic_0001>

<bundles_post_ra>
// kernel: tpu_custom_call.1
= control target key start
LH: loop header
LB: loop body
LE: loop exit
PB: predicated region body
PF: predicated region fallthrough
CT: control target
= control target key end

     0   :  { %8 = vsyncpa [#allocation4], 0  ;;  %s4554_s0 = inlined_call_operand.vmem [shape: bf16[2,16,16,4], index: 0, kind: input, shape index: {}]   ;;  %s4555_s1 = inlined_call_operand.vmem [shape: bf16[36,128], index: 1, kind: input, shape index: {}]   ;;  %s4556_s2 = inlined_call_operand.vmem [shape: f32[1,128], index: 2, kind: input, shape index: {}]   ;;  %s4557_s3 = inlined_call_operand.hbm [shape: f32[2,16,16,128], index: 3, kind: output, shape index: {}]  }
   0x1   :  { %10 = vsyncpa [#allocation4 + $0x1], 0  ;;  %s3032_s12 = smov 0   ;;  %s3034_s13 = smov 0  }
   0x2   :  { %s3036_s14 = smov 0   ;;  %s3038_s15 = smov 0  }
   0x3 LB: > { %s3053_s16 = sadd.s32 4294967295, %s2999_s15   ;;  %s2041_s17 = sadd.s32 4294967294, %s2999_s15   ;;  %s2999_s15 = sphi %s3038_s15, %s4681_s15   ;;  %s2995_s14 = sphi %s3036_s14, %s4680_s14   ;;  %s2991_s13 = sphi %s3034_s13, %s4679_s13   ;;  %s2987_s12 = sphi %s3032_s12, %s4678_s12  }
   0x4   : > { %s3057_s18 = sadd.s32 1, %s2999_s15   ;;  %s91_s19 = sadd.s32 1, %s2995_s14 }
   0x5   : > { %s88_s20 = ssub.s32 %s2999_s15, %s3057_s18  ;;  %p101_p0 = scmp.ne.s32.totalorder %s2995_s14, %s2991_s13 }
   0x6   : > { %p89_p1 = scmp.eq.s32.totalorder %s88_s20, 0  ;;  %p102_p2 = scmp.eq.s32.totalorder %s3053_s16, 1 }
   0x7   : > { %p107_p3 = scmp.ne.s32.totalorder %s2991_s13, %s2987_s12  ;;  %p108_p4 = scmp.eq.s32.totalorder %s2041_s17, 1 }
   0x8   : > { %s3068_s21 = scalar_select %p89_p1, %s2995_s14, %s91_s19  }
   0x9   : > { %p3070_p5 = por %p102_p2, %p101_p0  ;;  %p3074_p6 = por %p108_p4, %p107_p3 }
   0xa   : > { %p2044_p7 = scmp.ge.s32.totalorder %s2999_s15, 1  ;;  %p140_p8 = scmp.lt.s32.totalorder %s2999_s15, 3 }
   0xc   : > { %p141_p9 = pnand %p2044_p7, %p140_p8 }
   0xe   : > { %144 = sbr.rel (%p141_p9) target bundleno = 666 (0x29a), region = 32 }
  0x15   : > { %p164_p10 = scmp.lt.s32.totalorder %s3053_s16, 1  ;;  %vm170_vm0 = vcmask 31744   ;;  %vm173_vm1 = vcmask 25600   ;;  %v3001_v0 = vmov 0.0   ;;  %s3002_s29 = smov 4   ;;  %vm621_vm2 = vcmask 1046528  }
  0x16   : > { %181 = vst.msk [vmem:[#allocation2 + $0x48] sm:$0xff] %vm170_vm0, %v3001_v0  ;;  %182 = vst.msk [vmem:[#allocation2 + $0x50] sm:$0xff] %vm170_vm0, %v3001_v0  ;;  %s3003_s30 = smov 8   ;;  %s3004_s4 = smov 12   ;;  %vm1002_vm3 = vcmask 1045504   ;;  %vm1736_vm4 = vcmask 1041408  }
  0x17   : > { %183 = vst.msk [vmem:[#allocation2 + $0x58] sm:$0x3] %vm173_vm1, %v3001_v0  ;;  %174 = vst.msk [vmem:[#allocation2 + $0x10] sm:$0x3] %vm173_vm1, %v3001_v0  ;;  %s165_s24 = scalar_select %p164_p10, %s3053_s16, 1  ;;  %vm1413_vm5 = vcmask 64512  }
  0x18   : > { %171 = vst.msk [vmem:[#allocation2] sm:$0xff] %vm170_vm0, %v3001_v0  ;;  %172 = vst.msk [vmem:[#allocation2 + $0x8] sm:$0xff] %vm170_vm0, %v3001_v0  ;;  %s3005_s5 = smov 16   ;;  %s3006_s6 = smov 20   ;;  %vm1446_vm6 = vcmask 97280   ;;  %vm1479_vm7 = vcmask 130048  }
  0x19   : > { %175 = vst.msk [vmem:[#allocation2 + $0x18] sm:$0xff] %vm170_vm0, %v3001_v0  ;;  %176 = vst.msk [vmem:[#allocation2 + $0x20] sm:$0xff] %vm170_vm0, %v3001_v0  ;;  %s2073_s25 = sshll.u32 %s165_s24, 7  ;;  %s3007_s9 = smov 24   ;;  %vm1512_vm8 = vcmask 162816   ;;  %vm1545_vm9 = vcmask 195584  }
  0x1a   : > { %177 = vst.msk [vmem:[#allocation2 + $0x28] sm:$0x3] %vm173_vm1, %v3001_v0  ;;  %180 = vst.msk [vmem:[#allocation2 + $0x40] sm:$0x3] %vm173_vm1, %v3001_v0  ;;  %s3141_s28 = scalar_lea.vmem %s4554_s0, %s2073_s25  ;;  %s3008_s20 = smov 28   ;;  %vm1578_vm10 = vcmask 228352  }
  0x1b   : > { %178 = vst.msk [vmem:[#allocation2 + $0x30] sm:$0xff] %vm170_vm0, %v3001_v0  ;;  %179 = vst.msk [vmem:[#allocation2 + $0x38] sm:$0xff] %vm170_vm0, %v3001_v0  ;;  %v2140_v1 = vld [vmem:[%s3141_s28 + $0x10] sm:$0xff]   ;;  %v2076_v2 = vld [vmem:[%s3141_s28] sm:$0xff]   ;;  %s3009_s24 = smov 32   ;;  %vm1611_vm11 = vcmask 261120  }
  0x1c   : > { %184 = vst.msk [vmem:[#allocation2 + $0x60] sm:$0xff] %vm170_vm0, %v3001_v0  ;;  %185 = vst.msk [vmem:[#allocation2 + $0x68] sm:$0xff] %vm170_vm0, %v3001_v0  ;;  %v2141_v3 = vld [vmem:[%s3141_s28 + $0x18] sm:$0xff]   ;;  %v2085_v4 = vunpack.c.l.bf16 %v2140_v1  ;;  %v2086_v5 = vunpack.c.h.bf16 %v2140_v1  ;;  %v2077_v6 = vunpack.c.l.bf16 %v2076_v2  ;;  %v2078_v7 = vunpack.c.h.bf16 %v2076_v2  ;;  %v2139_v8 = vld [vmem:[%s3141_s28 + $0x8] sm:$0xff]   ;;  %s161_s25 = sand.u32 1, %s2991_s13   ;;  %s3010_s10 = smov [#allocation3]  }
  0x1d   : > { %186 = vst.msk [vmem:[#allocation2 + $0x70] sm:$0x3] %vm173_vm1, %v3001_v0  ;;  %189 = vst.msk [vmem:[#allocation2 + $0x88] sm:$0x3] %vm173_vm1, %v3001_v0  ;;  %v2143_v9 = vld [vmem:[%s3141_s28 + $0x28] sm:$0xff]   ;;  %v2142_v10 = vld [vmem:[%s3141_s28 + $0x20] sm:$0xff]   ;;  %v2089_v11 = vunpack.c.l.bf16 %v2141_v3  ;;  %v2090_v12 = vunpack.c.h.bf16 %v2141_v3  ;;  %v2081_v13 = vunpack.c.l.bf16 %v2139_v8  ;;  %v2082_v14 = vunpack.c.h.bf16 %v2139_v8 }
  0x1e   : > { %187 = vst.msk [vmem:[#allocation2 + $0x78] sm:$0xff] %vm170_vm0, %v3001_v0  ;;  %188 = vst.msk [vmem:[#allocation2 + $0x80] sm:$0xff] %vm170_vm0, %v3001_v0  ;;  %v2145_v15 = vld [vmem:[%s3141_s28 + $0x38] sm:$0xff]   ;;  %v2144_v16 = vld [vmem:[%s3141_s28 + $0x30] sm:$0xff]   ;;  %v2097_v18 = vunpack.c.l.bf16 %v2143_v9  ;;  %v2098_v19 = vunpack.c.h.bf16 %v2143_v9  ;;  %v2093_v20 = vunpack.c.l.bf16 %v2142_v10  ;;  %v2094_v21 = vunpack.c.h.bf16 %v2142_v10  ;;  %s4512_s8 = scalar_lea.sflag [#allocation4], %s161_s25  ;;  %s2941_s11 = sshll.u32 %s3010_s10, 4  ;;  %s2942_s11 = int_to_ptr.vmem [resolvable:$false] %s2941_s11 }
  0x1f   : > { %190 = vst.msk [vmem:[#allocation2 + $0x90] sm:$0xff] %vm170_vm0, %v3001_v0  ;;  %191 = vst.msk [vmem:[#allocation2 + $0x98] sm:$0xff] %vm170_vm0, %v3001_v0  ;;  %v2147_v17 = vld [vmem:[%s3141_s28 + $0x48] sm:$0xff]   ;;  %v2146_v22 = vld [vmem:[%s3141_s28 + $0x40] sm:$0xff]   ;;  %v2105_v25 = vunpack.c.l.bf16 %v2145_v15  ;;  %v2106_v26 = vunpack.c.h.bf16 %v2145_v15  ;;  %v2101_v27 = vunpack.c.l.bf16 %v2144_v16  ;;  %v2102_v28 = vunpack.c.h.bf16 %v2144_v16  ;;  %s2943_s17 = scalar_lea.vmem %s2942_s11, 8192 }
  0x20   : > { %192 = vst.msk [vmem:[#allocation2 + $0xa0] sm:$0x3] %vm173_vm1, %v3001_v0  ;;  %195 = vst.msk [vmem:[#allocation2 + $0xb8] sm:$0x3] %vm173_vm1, %v3001_v0  ;;  %v2149_v23 = vld [vmem:[%s3141_s28 + $0x58] sm:$0xff]   ;;  %v2148_v24 = vld [vmem:[%s3141_s28 + $0x50] sm:$0xff]   ;;  %v2113_v31 = vunpack.c.l.bf16 %v2147_v17  ;;  %v2114_v32 = vunpack.c.h.bf16 %v2147_v17  ;;  %v2109_v33 = vunpack.c.l.bf16 %v2146_v22  ;;  %v2110_v34 = vunpack.c.h.bf16 %v2146_v22 }
  0x21   : > { %193 = vst.msk [vmem:[#allocation2 + $0xa8] sm:$0xff] %vm170_vm0, %v3001_v0  ;;  %194 = vst.msk [vmem:[#allocation2 + $0xb0] sm:$0xff] %vm170_vm0, %v3001_v0  ;;  %v2151_v29 = vld [vmem:[%s3141_s28 + $0x68] sm:$0xff]   ;;  %v2150_v30 = vld [vmem:[%s3141_s28 + $0x60] sm:$0xff]   ;;  %v2121_v37 = vunpack.c.l.bf16 %v2149_v23  ;;  %v2122_v38 = vunpack.c.h.bf16 %v2149_v23  ;;  %v2117_v39 = vunpack.c.l.bf16 %v2148_v24  ;;  %v2118_v40 = vunpack.c.h.bf16 %v2148_v24 }
  0x22   : > { %196 = vst.msk [vmem:[#allocation2 + $0xc0] sm:$0xff] %vm170_vm0, %v3001_v0  ;;  %197 = vst.msk [vmem:[#allocation2 + $0xc8] sm:$0xff] %vm170_vm0, %v3001_v0  ;;  %v2153_v35 = vld [vmem:[%s3141_s28 + $0x78] sm:$0xff]   ;;  %v2152_v36 = vld [vmem:[%s3141_s28 + $0x70] sm:$0xff]   ;;  %v2129_v41 = vunpack.c.l.bf16 %v2151_v29  ;;  %v2130_v42 = vunpack.c.h.bf16 %v2151_v29  ;;  %v2125_v43 = vunpack.c.l.bf16 %v2150_v30  ;;  %v2126_v44 = vunpack.c.h.bf16 %v2150_v30  ;;  %s2045_s28 = sshll.u32 %s161_s25, 8 }
  0x23   : > { %198 = vst.msk [vmem:[#allocation2 + $0xd0] sm:$0x3] %vm173_vm1, %v3001_v0  ;;  %201 = vst.msk [vmem:[#allocation2 + $0xe8] sm:$0x3] %vm173_vm1, %v3001_v0  ;;  %v2137_v45 = vunpack.c.l.bf16 %v2153_v35  ;;  %v2138_v46 = vunpack.c.h.bf16 %v2153_v35  ;;  %v2133_v47 = vunpack.c.l.bf16 %v2152_v36  ;;  %v2134_v48 = vunpack.c.h.bf16 %v2152_v36 }
  0x24   : > { %199 = vst.msk [vmem:[#allocation2 + $0xd8] sm:$0xff] %vm170_vm0, %v3001_v0  ;;  %200 = vst.msk [vmem:[#allocation2 + $0xe0] sm:$0xff] %vm170_vm0, %v3001_v0  ;;  %vm1687_vm12 = vcmask 293888  }
  0x25   : > { %202 = vst.msk [vmem:[#allocation2 + $0xf0] sm:$0xff] %vm170_vm0, %v3001_v0  ;;  %203 = vst.msk [vmem:[#allocation2 + $0xf8] sm:$0xff] %vm170_vm0, %v3001_v0 }
  0x26   : > { %204 = vst.msk [vmem:[#allocation2 + $0x100] sm:$0x3] %vm173_vm1, %v3001_v0  ;;  %207 = vst.msk [vmem:[#allocation2 + $0x118] sm:$0x3] %vm173_vm1, %v3001_v0 }
  0x27   : > { %205 = vst.msk [vmem:[#allocation2 + $0x108] sm:$0xff] %vm170_vm0, %v3001_v0  ;;  %206 = vst.msk [vmem:[#allocation2 + $0x110] sm:$0xff] %vm170_vm0, %v3001_v0 }
  0x28   : > { %208 = vst.msk [vmem:[#allocation2 + $0x120] sm:$0xff] %vm170_vm0, %v3001_v0  ;;  %209 = vst.msk [vmem:[#allocation2 + $0x128] sm:$0xff] %vm170_vm0, %v3001_v0 }
  0x29   : > { %210 = vst.msk [vmem:[#allocation2 + $0x130] sm:$0x3] %vm173_vm1, %v3001_v0  ;;  %213 = vst.msk [vmem:[#allocation2 + $0x148] sm:$0x3] %vm173_vm1, %v3001_v0 }
  0x2a   : > { %211 = vst.msk [vmem:[#allocation2 + $0x138] sm:$0xff] %vm170_vm0, %v3001_v0  ;;  %212 = vst.msk [vmem:[#allocation2 + $0x140] sm:$0xff] %vm170_vm0, %v3001_v0 }
  0x2b   : > { %214 = vst.msk [vmem:[#allocation2 + $0x150] sm:$0xff] %vm170_vm0, %v3001_v0  ;;  %215 = vst.msk [vmem:[#allocation2 + $0x158] sm:$0xff] %vm170_vm0, %v3001_v0 }
  0x2c   : > { %216 = vst.msk [vmem:[#allocation2 + $0x160] sm:$0x3] %vm173_vm1, %v3001_v0  ;;  %219 = vst.msk [vmem:[#allocation2 + $0x178] sm:$0x3] %vm173_vm1, %v3001_v0 }
  0x2d   : > { %217 = vst.msk [vmem:[#allocation2 + $0x168] sm:$0xff] %vm170_vm0, %v3001_v0  ;;  %218 = vst.msk [vmem:[#allocation2 + $0x170] sm:$0xff] %vm170_vm0, %v3001_v0 }
  0x2e   : > { %220 = vst.msk [vmem:[#allocation2 + $0x180] sm:$0xff] %vm170_vm0, %v3001_v0  ;;  %221 = vst.msk [vmem:[#allocation2 + $0x188] sm:$0xff] %vm170_vm0, %v3001_v0 }
  0x2f   : > { %222 = vst.msk [vmem:[#allocation2 + $0x190] sm:$0x3] %vm173_vm1, %v3001_v0  ;;  %225 = vst.msk [vmem:[#allocation2 + $0x1a8] sm:$0x3] %vm173_vm1, %v3001_v0 }
  0x30   : > { %223 = vst.msk [vmem:[#allocation2 + $0x198] sm:$0xff] %vm170_vm0, %v3001_v0  ;;  %224 = vst.msk [vmem:[#allocation2 + $0x1a0] sm:$0xff] %vm170_vm0, %v3001_v0 }
  0x31   : > { %295 = vst.msk [vmem:[#allocation2 + $0x49] sm:$0xff] %vm170_vm0, %v2085_v4  ;;  %296 = vst.msk [vmem:[#allocation2 + $0x51] sm:$0xff] %vm170_vm0, %v2086_v5 }
  0x32   : > { %291 = vst.msk [vmem:[#allocation2 + $0x19] sm:$0xff] %vm170_vm0, %v2077_v6  ;;  %292 = vst.msk [vmem:[#allocation2 + $0x21] sm:$0xff] %vm170_vm0, %v2078_v7 }
  0x33   : > { %297 = vst.msk [vmem:[#allocation2 + $0x61] sm:$0xff] %vm170_vm0, %v2089_v11  ;;  %298 = vst.msk [vmem:[#allocation2 + $0x69] sm:$0xff] %vm170_vm0, %v2090_v12 }
  0x34   : > { %293 = vst.msk [vmem:[#allocation2 + $0x31] sm:$0xff] %vm170_vm0, %v2081_v13  ;;  %294 = vst.msk [vmem:[#allocation2 + $0x39] sm:$0xff] %vm170_vm0, %v2082_v14 }
  0x35   : > { %301 = vst.msk [vmem:[#allocation2 + $0x91] sm:$0xff] %vm170_vm0, %v2097_v18  ;;  %302 = vst.msk [vmem:[#allocation2 + $0x99] sm:$0xff] %vm170_vm0, %v2098_v19 }
  0x36   : > { %299 = vst.msk [vmem:[#allocation2 + $0x79] sm:$0xff] %vm170_vm0, %v2093_v20  ;;  %300 = vst.msk [vmem:[#allocation2 + $0x81] sm:$0xff] %vm170_vm0, %v2094_v21 }
  0x37   : > { %305 = vst.msk [vmem:[#allocation2 + $0xc1] sm:$0xff] %vm170_vm0, %v2105_v25  ;;  %306 = vst.msk [vmem:[#allocation2 + $0xc9] sm:$0xff] %vm170_vm0, %v2106_v26 }
  0x38   : > { %303 = vst.msk [vmem:[#allocation2 + $0xa9] sm:$0xff] %vm170_vm0, %v2101_v27  ;;  %304 = vst.msk [vmem:[#allocation2 + $0xb1] sm:$0xff] %vm170_vm0, %v2102_v28  ;;  %v3187_v49 = vld [vmem:[#allocation2 + $0x48] sm:$0xff]  ;;  %v3189_v50 = vld [vmem:[#allocation2 + $0x50] sm:$0xff] }
  0x39   : > { %309 = vst.msk [vmem:[#allocation2 + $0xf1] sm:$0xff] %vm170_vm0, %v2113_v31  ;;  %310 = vst.msk [vmem:[#allocation2 + $0xf9] sm:$0xff] %vm170_vm0, %v2114_v32  ;;  %v3191_v51 = vld [vmem:[#allocation2 + $0x18] sm:$0xff]  ;;  %v2278_v52 = vpack.i.bf16 %v3189_v50, %v3187_v49  ;;  %v3199_v53 = vld [vmem:[#allocation2 + $0x20] sm:$0xff] }
  0x3a   : > { %307 = vst.msk [vmem:[#allocation2 + $0xd9] sm:$0xff] %vm170_vm0, %v2109_v33  ;;  %308 = vst.msk [vmem:[#allocation2 + $0xe1] sm:$0xff] %vm170_vm0, %v2110_v34  ;;  %v3201_v54 = vld [vmem:[#allocation2 + $0x60] sm:$0xff]  ;;  %v3203_v55 = vld [vmem:[#allocation2 + $0x68] sm:$0xff]  ;;  %v2268_v56 = vpack.i.bf16 %v3199_v53, %v3191_v51 }
  0x3b   : > { %313 = vst.msk [vmem:[#allocation2 + $0x121] sm:$0xff] %vm170_vm0, %v2121_v37  ;;  %314 = vst.msk [vmem:[#allocation2 + $0x129] sm:$0xff] %vm170_vm0, %v2122_v38  ;;  %v3207_v57 = vld [vmem:[#allocation2 + $0x30] sm:$0xff]  ;;  %v3209_v58 = vld [vmem:[#allocation2 + $0x38] sm:$0xff]  ;;  %2279 = vrot.lane.b32.xlu1 %v2278_v52, %s3002_s29  ;;  %v2283_v59 = vpack.i.bf16 %v3203_v55, %v3201_v54  ;;  %v642_v35 = vrot.slane %v3201_v54, 1  ;;  %v643_v36 = vrot.slane %v3203_v55, 1 }
  0x3c   : > { %311 = vst.msk [vmem:[#allocation2 + $0x109] sm:$0xff] %vm170_vm0, %v2117_v39  ;;  %312 = vst.msk [vmem:[#allocation2 + $0x111] sm:$0xff] %vm170_vm0, %v2118_v40  ;;  %2269 = vrot.lane.b32.xlu0 %v2268_v56, %s3002_s29  ;;  %v2273_v60 = vpack.i.bf16 %v3209_v58, %v3207_v57  ;;  %v3217_v61 = vld [vmem:[#allocation2 + $0x90] sm:$0xff]  ;;  %v3219_v62 = vld [vmem:[#allocation2 + $0x98] sm:$0xff] }
  0x3d   : > { %317 = vst.msk [vmem:[#allocation2 + $0x151] sm:$0xff] %vm170_vm0, %v2129_v41  ;;  %318 = vst.msk [vmem:[#allocation2 + $0x159] sm:$0xff] %vm170_vm0, %v2130_v42  ;;  %v3221_v63 = vld [vmem:[#allocation2 + $0x78] sm:$0xff]  ;;  %v3223_v0 = vld [vmem:[#allocation2 + $0x80] sm:$0xff]  ;;  %v2293_v1 = vpack.i.bf16 %v3219_v62, %v3217_v61 }
  0x3e   : > { %315 = vst.msk [vmem:[#allocation2 + $0x139] sm:$0xff] %vm170_vm0, %v2125_v43  ;;  %316 = vst.msk [vmem:[#allocation2 + $0x141] sm:$0xff] %vm170_vm0, %v2126_v44  ;;  %v2288_v2 = vpack.i.bf16 %v3223_v0, %v3221_v63  ;;  %v3231_v3 = vld [vmem:[#allocation2 + $0xc0] sm:$0xff]  ;;  %v3233_v4 = vld [vmem:[#allocation2 + $0xc8] sm:$0xff]  ;;  %v647_v42 = vrot.slane %v3221_v63, 1  ;;  %v648_v43 = vrot.slane %v3223_v0, 1 }
  0x3f   : > { %321 = vst.msk [vmem:[#allocation2 + $0x181] sm:$0xff] %vm170_vm0, %v2137_v45  ;;  %322 = vst.msk [vmem:[#allocation2 + $0x189] sm:$0xff] %vm170_vm0, %v2138_v46  ;;  %2284 = vrot.lane.b32.xlu1 %v2283_v59, %s3002_s29  ;;  %v3235_v5 = vld [vmem:[#allocation2 + $0xa8] sm:$0xff]  ;;  %v3237_v6 = vld [vmem:[#allocation2 + $0xb0] sm:$0xff]  ;;  %v2303_v7 = vpack.i.bf16 %v3233_v4, %v3231_v3  ;;  %v644_v46 = vsel %vm621_vm2, %v642_v35, %v643_v36 }
  0x40   : > { %319 = vst.msk [vmem:[#allocation2 + $0x169] sm:$0xff] %vm170_vm0, %v2133_v47  ;;  %320 = vst.msk [vmem:[#allocation2 + $0x171] sm:$0xff] %vm170_vm0, %v2134_v48  ;;  %2274 = vrot.lane.b32.xlu0 %v2273_v60, %s3002_s29  ;;  %v2298_v8 = vpack.i.bf16 %v3237_v6, %v3235_v5  ;;  %v3245_v9 = vld [vmem:[#allocation2 + $0xf0] sm:$0xff]  ;;  %v3247_v10 = vld [vmem:[#allocation2 + $0xf8] sm:$0xff] }
  0x41   : > { %4600 = vst [vmem:[#allocation6_spill] sm:$0xff] %v3217_v61  ;;  %4601 = vst [vmem:[#allocation7_spill] sm:$0xff] %v3219_v62  ;;  %v3249_v11 = vld [vmem:[#allocation2 + $0xd8] sm:$0xff]  ;;  %v3251_v12 = vld [vmem:[#allocation2 + $0xe0] sm:$0xff]  ;;  %v3256_v13 = vpack.i.bf16 %v3247_v10, %v3245_v9 }
  0x42   : > { %4602 = vst [vmem:[#allocation8_spill] sm:$0xff] %v3221_v63  ;;  %4603 = vst [vmem:[#allocation9_spill] sm:$0xff] %v3223_v0  ;;  %v2308_v14 = vpack.i.bf16 %v3251_v12, %v3249_v11  ;;  %v3261_v15 = vld [vmem:[#allocation2 + $0x120] sm:$0xff]  ;;  %v3263_v16 = vld [vmem:[#allocation2 + $0x128] sm:$0xff] }
  0x43   : > { %4604 = vst [vmem:[#allocation10_spill] sm:$0xff] %v3237_v6  ;;  %2294 = vrot.lane.b32.xlu1 %v2293_v1, %s3002_s29  ;;  %v3265_v17 = vld [vmem:[#allocation2 + $0x108] sm:$0xff]  ;;  %v3267_v18 = vld [vmem:[#allocation2 + $0x110] sm:$0xff]  ;;  %v3273_v19 = vpack.i.bf16 %v3263_v16, %v3261_v15  ;;  %v3328_v34 = vld [vmem:[#allocation2] sm:$0xff] }
  0x44   : > { %2289 = vrot.lane.b32.xlu0 %v2288_v2, %s3002_s29  ;;  %v2318_v20 = vpack.i.bf16 %v3267_v18, %v3265_v17  ;;  %v3278_v21 = vld [vmem:[#allocation2 + $0x150] sm:$0xff]  ;;  %v3280_v22 = vld [vmem:[#allocation2 + $0x158] sm:$0xff]  ;;  %v3333_v38 = vld [vmem:[#allocation2 + $0x88] sm:$0x3]  ;;  %v622_v41 = vrot.slane %v3328_v34, 1 }
  0x45   : > { %4605 = vst [vmem:[#allocation11_spill] sm:$0xff] %v3278_v21  ;;  %4606 = vst [vmem:[#allocation12_spill] sm:$0xff] %v3280_v22  ;;  %v3282_v23 = vld [vmem:[#allocation2 + $0x138] sm:$0xff]  ;;  %v3284_v24 = vld [vmem:[#allocation2 + $0x140] sm:$0xff]  ;;  %v3290_v25 = vpack.i.bf16 %v3280_v22, %v3278_v21  ;;  %v650_v44 = vrot.slane %v3333_v38, 1 }
  0x46   : > { %4607 = vst [vmem:[#allocation13_spill] sm:$0xff] %v3282_v23  ;;  %4608 = vst [vmem:[#allocation14_spill] sm:$0xff] %v3284_v24  ;;  %v3295_v26 = vpack.i.bf16 %v3284_v24, %v3282_v23  ;;  %v3297_v27 = vld [vmem:[#allocation2 + $0x180] sm:$0xff]  ;;  %v3299_v28 = vld [vmem:[#allocation2 + $0x188] sm:$0xff] }
  0x47   : > { %2304 = vrot.lane.b32.xlu1 %v2303_v7, %s3002_s29  ;;  %v3301_v29 = vld [vmem:[#allocation2 + $0x168] sm:$0xff]  ;;  %v3303_v30 = vld [vmem:[#allocation2 + $0x170] sm:$0xff]  ;;  %v3309_v31 = vpack.i.bf16 %v3299_v28, %v3297_v27  ;;  %4611 = vst [vmem:[#allocation17_spill] sm:$0xff] %v3333_v38  ;;  %v3349_v48 = vld [vmem:[#allocation2 + $0x198] sm:$0xff]  ;;  %v687_v38 = vrot.slane %v3282_v23, 1 }
  0x48   : > { %2299 = vrot.lane.b32.xlu0 %v2298_v8, %s3002_s29  ;;  %4609 = vst [vmem:[#allocation15_spill] sm:$0xff] %v3301_v29  ;;  %4610 = vst [vmem:[#allocation16_spill] sm:$0xff] %v3303_v30  ;;  %v3315_v32 = vpack.i.bf16 %v3303_v30, %v3301_v29  ;;  %v3325_v33 = vld [vmem:[#allocation2 + $0x70] sm:$0x3]  ;;  %v3336_v39 = vld [vmem:[#allocation2 + $0x8] sm:$0xff]  ;;  %v697_v63 = vrot.slane %v3301_v29, 1 }
  0x49   : > { %v645_v37 = vrot.slane %v3325_v33, 1  ;;  %v3338_v40 = vld [vmem:[#allocation2 + $0x10] sm:$0x3]  ;;  %v623_v45 = vrot.slane %v3336_v39, 1  ;;  %v3387_v0 = vld [vmem:[#allocation2 + $0x178] sm:$0x3] }
  0x4a   : > { %4615 = vst [vmem:[#allocation21_spill] sm:$0xff] %v3387_v0 }
  0x4b   : > { %2314 = vrot.lane.b32.xlu1 %v3256_v13, %s3002_s29  ;;  %v646_v47 = vsel %vm621_vm2, %v643_v36, %v645_v37  ;;  %v624_v35 = vsel %vm621_vm2, %v622_v41, %v623_v45  ;;  %v3366_v36 = vld [vmem:[#allocation2 + $0x148] sm:$0x3]  ;;  %v3368_v37 = vld [vmem:[#allocation2 + $0x160] sm:$0x3] }
  0x4c   : > { %2309 = vrot.lane.b32.xlu0 %v2308_v14, %s3002_s29  ;;  %v3353_v56 = vpack.i.bf16 %v646_v47, %v644_v46  ;;  %4613 = vst [vmem:[#allocation19_spill] sm:$0xff] %v3366_v36  ;;  %4614 = vst [vmem:[#allocation20_spill] sm:$0xff] %v3368_v37  ;;  %v3378_v47 = vld [vmem:[#allocation2 + $0x28] sm:$0x3] }
  0x4f   : > { %2324 = vrot.lane.b32.xlu1 %v3273_v19, %s3002_s29 }
  0x50   : > { %2319 = vrot.lane.b32.xlu0 %v2318_v20, %s3002_s29 }
  0x53   : > { %2334 = vrot.lane.b32.xlu1 %v3290_v25, %s3002_s29 }
  0x54   : > { %2329 = vrot.lane.b32.xlu0 %v3295_v26, %s3002_s29 }
  0x57   : > { %2344 = vrot.lane.b32.xlu1 %v3309_v31, %s3002_s29 }
  0x58   : > { %2339 = vrot.lane.b32.xlu0 %v3315_v32, %s3002_s29  ;;  %s4439_s29 = scalar_lea.vmem [#allocation3], %s2045_s28 }
  0x5b   : > { %2354 = vrot.lane.b32.xlu1 %v2278_v52, %s3003_s30  ;;  %v3351_v52 = vld [vmem:[#allocation2 + $0x1a0] sm:$0xff] }
  0x5c   : > { %2349 = vrot.lane.b32.xlu0 %v2273_v60, %s3003_s30  ;;  %v627_v60 = vrot.slane %v3191_v51, 1 }
  0x5f   : > { %2364 = vrot.lane.b32.xlu1 %v2288_v2, %s3003_s30  ;;  %v3358_v2 = vld [vmem:[#allocation2 + $0xa0] sm:$0x3] }
  0x60   : > { %2359 = vrot.lane.b32.xlu0 %v2283_v59, %s3003_s30  ;;  %v625_v59 = vrot.slane %v3338_v40, 1  ;;  %4612 = vst [vmem:[#allocation18_spill] sm:$0xff] %v3358_v2 }
  0x63   : > { %2374 = vrot.lane.b32.xlu1 %v2298_v8, %s3003_s30  ;;  %v649_v8 = vsel %vm621_vm2, %v647_v42, %v648_v43  ;;  %v652_v42 = vrot.slane %v3217_v61, 1  ;;  %v693_v61 = vrot.slane %v3280_v22, 1  ;;  %v3398_v22 = vld [vmem:[#allocation2 + $0x58] sm:$0x3] }
  0x64   : > { %2369 = vrot.lane.b32.xlu0 %v2293_v1, %s3003_s30  ;;  %v628_v1 = vrot.slane %v3199_v53, 1 }
  0x66   : > { %v629_v41 = vsel %vm621_vm2, %v627_v60, %v628_v1  ;;  %v630_v60 = vrot.slane %v3378_v47, 1 }
  0x67   : > { %2384 = vrot.lane.b32.xlu1 %v2308_v14, %s3003_s30  ;;  %v651_v14 = vsel %vm621_vm2, %v648_v43, %v650_v44  ;;  %v653_v43 = vrot.slane %v3219_v62, 1  ;;  %v626_v44 = vsel %vm621_vm2, %v623_v45, %v625_v59  ;;  %v695_v62 = vrot.slane %v3368_v37, 1 }
  0x68   : > { %2379 = vrot.lane.b32.xlu0 %v2303_v7, %s3003_s30  ;;  %v2423_v7 = vpack.i.bf16 %v3351_v52, %v3349_v48  ;;  %v3370_v46 = vpack.i.bf16 %v651_v14, %v649_v8  ;;  %v688_v8 = vrot.slane %v3284_v24, 1  ;;  %v690_v14 = vrot.slane %v3366_v36, 1  ;;  %v3404_v24 = vld [vmem:[#allocation2 + $0x40] sm:$0x3] }
  0x69   : > { %v632_v45 = vrot.slane %v3207_v57, 1  ;;  %v637_v59 = vrot.slane %v3187_v49, 1  ;;  %v700_v36 = vrot.slane %v3387_v0, 1  ;;  %v3491_v0 = vld [vmem:[#allocation2 + $0x130] sm:$0x3] }
  0x6a   : > { %v689_v37 = vsel %vm621_vm2, %v687_v38, %v688_v8 }
  0x6b   : > { %2394 = vrot.lane.b32.xlu1 %v2318_v20, %s3003_s30  ;;  %v655_v20 = vrot.slane %v3358_v2, 1  ;;  %v654_v2 = vsel %vm621_vm2, %v652_v42, %v653_v43  ;;  %v696_v42 = vsel %vm621_vm2, %v693_v61, %v695_v62  ;;  %v635_v62 = vrot.slane %v3404_v24, 1 }
  0x6c   : > { %2389 = vrot.lane.b32.xlu0 %v3256_v13, %s3003_s30  ;;  %v692_v13 = vrot.slane %v3278_v21, 1 }
  0x6d   : > { %v656_v21 = vsel %vm621_vm2, %v653_v43, %v655_v20  ;;  %v638_v43 = vrot.slane %v3189_v50, 1 }
  0x6e   : > { %v694_v23 = vsel %vm621_vm2, %v692_v13, %v693_v61  ;;  %v3414_v20 = vpack.i.bf16 %v656_v21, %v654_v2  ;;  %v633_v61 = vrot.slane %v3209_v58, 1 }
  0x6f   : > { %2404 = vrot.lane.b32.xlu1 %v3295_v26, %s3003_s30  ;;  %v698_v26 = vrot.slane %v3303_v30, 1  ;;  %v3416_v29 = vpack.i.bf16 %v696_v42, %v694_v23  ;;  %v2428_v23 = vpack.i.bf16 %v626_v44, %v624_v35  ;;  %v657_v35 = vrot.slane %v3235_v5, 1 }
  0x70   : > { %2399 = vrot.lane.b32.xlu0 %v3273_v19, %s3003_s30  ;;  %v691_v19 = vsel %vm621_vm2, %v688_v8, %v690_v14  ;;  %4616 = vst [vmem:[#allocation22_spill] sm:$0xff] %v3414_v20  ;;  %v631_v8 = vsel %vm621_vm2, %v628_v1, %v630_v60  ;;  %v640_v14 = vrot.slane %v3398_v22, 1  ;;  %v636_v2 = vsel %vm621_vm2, %v633_v61, %v635_v62  ;;  %v3473_v62 = vld [vmem:[#allocation2 + $0x100] sm:$0x3] }
  0x71   : > { %v3412_v38 = vpack.i.bf16 %v691_v19, %v689_v37  ;;  %v701_v37 = vsel %vm621_vm2, %v698_v26, %v700_v36  ;;  %v3429_v21 = vpack.i.bf16 %v631_v8, %v629_v41  ;;  %v3441_v36 = vld [vmem:[#allocation2 + $0xb8] sm:$0x3]  ;;  %v658_v44 = vrot.slane %v3237_v6, 1 }
  0x72   : > { %v3437_v1 = vsel %vm621_vm2, %v638_v43, %v640_v14  ;;  %4617 = vst [vmem:[#allocation23_spill] sm:$0xff] %v3441_v36  ;;  %v660_v41 = vrot.slane %v3441_v36, 1  ;;  %v667_v60 = vrot.slane %v3249_v11, 1  ;;  %v663_v8 = vrot.slane %v3233_v4, 1 }
  0x73   : > { %2414 = vrot.lane.b32.xlu1 %v3315_v32, %s3003_s30  ;;  %v699_v32 = vsel %vm621_vm2, %v697_v63, %v698_v26  ;;  %v634_v63 = vsel %vm621_vm2, %v632_v45, %v633_v61  ;;  %v3455_v45 = vld [vmem:[#allocation2 + $0xe8] sm:$0x3]  ;;  %v668_v26 = vrot.slane %v3251_v12, 1  ;;  %v659_v5 = vsel %vm621_vm2, %v657_v35, %v658_v44  ;;  %v3471_v61 = vld [vmem:[#allocation2 + $0x118] sm:$0x3] }
  0x74   : > { %2409 = vrot.lane.b32.xlu0 %v3290_v25, %s3003_s30  ;;  %v3426_v13 = vpack.i.bf16 %v701_v37, %v699_v32  ;;  %v3434_v25 = vsel %vm621_vm2, %v637_v59, %v638_v43  ;;  %v3457_v59 = vld [vmem:[#allocation2 + $0xd0] sm:$0x3]  ;;  %v661_v19 = vsel %vm621_vm2, %v658_v44, %v660_v41  ;;  %v670_v42 = vrot.slane %v3455_v45, 1 }
  0x75   : > { %v662_v43 = vrot.slane %v3231_v3, 1  ;;  %v665_v14 = vrot.slane %v3457_v59, 1  ;;  %v3477_v32 = vpack.i.bf16 %v661_v19, %v659_v5  ;;  %v669_v37 = vsel %vm621_vm2, %v667_v60, %v668_v26 }
  0x76   : > { %v677_v35 = vrot.slane %v3265_v17, 1  ;;  %v678_v44 = vrot.slane %v3267_v18, 1  ;;  %v680_v41 = vrot.slane %v3471_v61, 1  ;;  %v675_v60 = vrot.slane %v3473_v62, 1 }
  0x77   : > { %2424 = vrot.lane.b32.xlu1 %v2423_v7, %s3003_s30  ;;  %v3450_v7 = vpack.i.bf16 %v636_v2, %v634_v63  ;;  %4618 = vst [vmem:[#allocation24_spill] sm:$0xff] %v3477_v32  ;;  %v673_v63 = vrot.slane %v3247_v10, 1  ;;  %v671_v2 = vsel %vm621_vm2, %v668_v26, %v670_v42  ;;  %v664_v5 = vsel %vm621_vm2, %v662_v43, %v663_v8 }
  0x78   : > { %2419 = vrot.lane.b32.xlu0 %v3309_v31, %s3003_s30  ;;  %v3447_v31 = vpack.i.bf16 %v3437_v1, %v3434_v25  ;;  %v666_v19 = vsel %vm621_vm2, %v663_v8, %v665_v14  ;;  %v3495_v36 = vpack.i.bf16 %v671_v2, %v669_v37  ;;  %v679_v43 = vsel %vm621_vm2, %v677_v35, %v678_v44 }
  0x79   : > { %v3499_v26 = vpack.i.bf16 %v666_v19, %v664_v5  ;;  %v681_v8 = vsel %vm621_vm2, %v678_v44, %v680_v41  ;;  %v676_v14 = vsel %vm621_vm2, %v673_v63, %v675_v60  ;;  %v682_v6 = vrot.slane %v3261_v15, 1  ;;  %v3523_v19 = vld [vmem:[#allocation2 + $0x190] sm:$0x3] }
  0x7a   : > { %v683_v30 = vrot.slane %v3263_v16, 1  ;;  %v800_v41 = vrot.slane %v3299_v28, 1  ;;  %v799_v5 = vrot.slane %v3297_v27, 1 }
  0x7b   : > { %2434 = vrot.lane.b32.xlu1 %v3429_v21, %s3004_s4 }
  0x7c   : > { %2429 = vrot.lane.b32.xlu0 %v2428_v23, %s3004_s4  ;;  %v672_v23 = vrot.slane %v3245_v9, 1  ;;  %v684_v35 = vsel %vm621_vm2, %v682_v6, %v683_v30  ;;  %v802_v6 = vrot.slane %v3523_v19, 1 }
  0x7e   : > { %v674_v42 = vsel %vm621_vm2, %v672_v23, %v673_v63 }
  0x7f   : > { %2444 = vrot.lane.b32.xlu1 %v3447_v31, %s3004_s4  ;;  %v2478_v23 = vpack.i.bf16 %v676_v14, %v674_v42 }
  0x80   : > { %2439 = vrot.lane.b32.xlu0 %v3450_v7, %s3004_s4 }
  0x83   : > { %2454 = vrot.lane.b32.xlu1 %v3370_v46, %s3004_s4 }
  0x84   : > { %2449 = vrot.lane.b32.xlu0 %v3353_v56, %s3004_s4 }
  0x87   : > { %2464 = vrot.lane.b32.xlu1 %v3477_v32, %s3004_s4  ;;  %v685_v32 = vrot.slane %v3491_v0, 1 }
  0x88   : > { %2459 = vrot.lane.b32.xlu0 %v3414_v20, %s3004_s4  ;;  %v3510_v20 = vpack.i.bf16 %v681_v8, %v679_v43  ;;  %v902_v43 = vrot.slane %v3351_v52, 1  ;;  %v901_v8 = vrot.slane %v3349_v48, 1 }
  0x89   : > { %v686_v44 = vsel %vm621_vm2, %v683_v30, %v685_v32  ;;  %v801_v30 = vsel %vm621_vm2, %v799_v5, %v800_v41  ;;  %v803_v32 = vsel %vm621_vm2, %v800_v41, %v802_v6  ;;  %v2518_v5 = vpack.i.bf16 %v669_v37, %v3434_v25 }
  0x8a   : > { %v3519_v63 = vpack.i.bf16 %v686_v44, %v684_v35  ;;  %v3532_v60 = vpack.i.bf16 %v803_v32, %v801_v30  ;;  %v3540_v35 = vld [vmem:[#allocation2 + $0x1a8] sm:$0x3]  ;;  %v2523_v44 = vpack.i.bf16 %v674_v42, %v671_v2  ;;  %v3549_v6 = vsel %vm621_vm2, %v901_v8, %v902_v43 }
  0x8b   : > { %2474 = vrot.lane.b32.xlu1 %v3495_v36, %s3004_s4  ;;  %v904_v41 = vrot.slane %v3540_v35, 1  ;;  %v1003_v2 = vrot.slane %v3328_v34, 2  ;;  %v1004_v42 = vrot.slane %v3336_v39, 2  ;;  %v1006_v25 = vrot.slane %v3338_v40, 2 }
  0x8c   : > { %2469 = vrot.lane.b32.xlu0 %v3499_v26, %s3004_s4  ;;  %v1044_v8 = vrot.slane %v3233_v4, 2  ;;  %v1046_v34 = vrot.slane %v3457_v59, 2  ;;  %v1009_v40 = vrot.slane %v3199_v53, 2  ;;  %v1049_v53 = vrot.slane %v3251_v12, 2 }
  0x8d   : > { %v3552_v30 = vsel %vm621_vm2, %v902_v43, %v904_v41  ;;  %v1005_v37 = vsel %vm1002_vm3, %v1003_v2, %v1004_v42  ;;  %v1043_v43 = vrot.slane %v3231_v3, 2  ;;  %v1007_v39 = vsel %vm1002_vm3, %v1004_v42, %v1006_v25 }
  0x8e   : > { %v1047_v4 = vsel %vm1002_vm3, %v1044_v8, %v1046_v34  ;;  %v1179_v41 = vrot.slane %v3297_v27, 2  ;;  %v1013_v27 = vrot.slane %v3207_v57, 2  ;;  %v2909_v57 = vld [vmem:[%s4555_s1 + $0x8] sm:$0xff]  }
  0x8f   : > { %2484 = vrot.lane.b32.xlu1 %v3510_v20, %s3004_s4  ;;  %v1045_v3 = vsel %vm1002_vm3, %v1043_v43, %v1044_v8 }
  0x90   : > { %2479 = vrot.lane.b32.xlu0 %v2478_v23, %s3004_s4 }
  0x93   : > { %2494 = vrot.lane.b32.xlu1 %v3412_v38, %s3004_s4 }
  0x94   : > { %2489 = vrot.lane.b32.xlu0 %v3519_v63, %s3004_s4 }
  0x97   : > { %2504 = vrot.lane.b32.xlu1 %v3426_v13, %s3004_s4 }
  0x98   : > { %2499 = vrot.lane.b32.xlu0 %v3416_v29, %s3004_s4  ;;  %s2074_s4 = sshll.u32 %s3053_s16, 12 }
  0x99   : > { %s4501_s7 = scalar_lea.hbm %s4557_s3, %s2074_s4 }
  0x9b   : > { %2514 = vrot.lane.b32.xlu1 %v3450_v7, %s3005_s5 }
  0x9c   : > { %2509 = vrot.lane.b32.xlu0 %v3429_v21, %s3005_s5  ;;  %v2528_v21 = vpack.i.bf16 %v3437_v1, %v676_v14  ;;  %v1008_v1 = vrot.slane %v3191_v51, 2  ;;  %v1011_v14 = vrot.slane %v3378_v47, 2  ;;  %v1048_v51 = vrot.slane %v3249_v11, 2 }
  0x9d   : > { %v1180_v47 = vrot.slane %v3299_v28, 2  ;;  %v1182_v11 = vrot.slane %v3523_v19, 2  ;;  %v1014_v28 = vrot.slane %v3209_v58, 2 }
  0x9e   : > { %v1010_v59 = vsel %vm1002_vm3, %v1008_v1, %v1009_v40  ;;  %v1050_v12 = vsel %vm1002_vm3, %v1048_v51, %v1049_v53 }
  0x9f   : > { %2524 = vrot.lane.b32.xlu1 %v2523_v44, %s3005_s5  ;;  %v1012_v44 = vsel %vm1002_vm3, %v1009_v40, %v1011_v14  ;;  %v1181_v19 = vsel %vm1002_vm3, %v1179_v41, %v1180_v47  ;;  %v1183_v25 = vsel %vm1002_vm3, %v1180_v47, %v1182_v11  ;;  %v1015_v8 = vsel %vm1002_vm3, %v1013_v27, %v1014_v28 }
  0xa0   : > { %2519 = vrot.lane.b32.xlu0 %v2518_v5, %s3005_s5  ;;  %v2908_v5 = vld [vmem:[%s4555_s1] sm:$0xff]   ;;  %v2563_v2 = vpack.i.bf16 %v1012_v44, %v1010_v59  ;;  %v3608_v58 = vpack.i.bf16 %v1183_v25, %v1181_v19  ;;  %v1053_v40 = vrot.slane %v3245_v9, 2  ;;  %v1054_v14 = vrot.slane %v3247_v10, 2 }
  0xa1   : > { %2173 = vmatprep.subr.bf16.mxu0 %v2908_v5  ;;  %2211 = vmatprep.subr.bf16.mxu1 %v2908_v5  ;;  %v1019_v9 = vrot.slane %v3189_v50, 2  ;;  %v1021_v10 = vrot.slane %v3398_v22, 2  ;;  %v1283_v59 = vrot.slane %v3540_v35, 2  ;;  %v1059_v11 = vrot.slane %v3267_v18, 2  ;;  %v4637_v22 = vld [vmem:[#allocation15_spill] sm:$0xff] }
  0xa2   : > { %2174 = vmatpush3.bf16.msra.mxu0 %v2908_v5  ;;  %4620 = vst [vmem:[#allocation26_spill] sm:$0xff] %v3608_v58  ;;  %2214 = vmatpush3.bf16.msra.mxu1 %v2908_v5  ;;  %v1055_v51 = vsel %vm1002_vm3, %v1053_v40, %v1054_v14 }
  0xa3   : > { %2534 = vrot.lane.b32.xlu1 %v3450_v7, %s3006_s6  ;;  %v2553_v7 = vpack.i.bf16 %v1007_v39, %v1005_v37  ;;  %2175 = vmatprep.subr.bf16.mxu0 %v2909_v57  ;;  %v1280_v39 = vrot.slane %v3349_v48, 2 }
  0xa4   : > { %2529 = vrot.lane.b32.xlu0 %v2528_v21, %s3005_s5  ;;  %2212 = vmatprep.subr.bf16.mxu1 %v2909_v57 }
  0xa6   : > { %2176 = vmatpush3.bf16.msra.mxu0 %v2909_v57  ;;  %2215 = vmatpush3.bf16.msra.mxu1 %v2909_v57 }
  0xa7   : > { %2544 = vrot.lane.b32.xlu1 %v3447_v31, %s3006_s6  ;;  %v1051_v31 = vrot.slane %v3455_v45, 2  ;;  %v1016_v45 = vrot.slane %v3404_v24, 2  ;;  %v1281_v24 = vrot.slane %v3351_v52, 2  ;;  %v1056_v52 = vrot.slane %v3473_v62, 2 }
  0xa8   : > { %2539 = vrot.lane.b32.xlu0 %v2478_v23, %s3006_s6  ;;  %v3589_v23 = vpack.i.bf16 %v1047_v4, %v1045_v3  ;;  %v2910_v3 = vld [vmem:[%s4555_s1 + $0x10] ss:$0 sps:$4 sm:$0x33]   ;;  %v1018_v4 = vrot.slane %v3187_v49, 2 }
  0xa9   : > { %v1052_v21 = vsel %vm1002_vm3, %v1049_v53, %v1051_v31  ;;  %v1017_v34 = vsel %vm1002_vm3, %v1014_v28, %v1016_v45  ;;  %2217 = vmatprep.subr.msk.bf16.mxu0 %vm1736_vm4, %v2910_v3  ;;  %v1738_v62 = vsel %vm1736_vm4, %v2910_v3, 0  ;;  %v1057_v53 = vsel %vm1002_vm3, %v1054_v14, %v1056_v52  ;;  %2218 = vmatprep.subr.msk.bf16.mxu1 %vm1736_vm4, %v2910_v3 }
  0xaa   : > { %4619 = vst [vmem:[#allocation25_spill] sm:$0xff] %v3589_v23  ;;  %v3614_v43 = vpack.i.bf16 %v1052_v21, %v1050_v12  ;;  %v2583_v48 = vpack.i.bf16 %v1017_v34, %v1015_v8  ;;  %2178 = vmatpush3.bf16.msra.mxu0 %v1738_v62  ;;  %v3641_v49 = vsel %vm1002_vm3, %v1280_v39, %v1281_v24  ;;  %v1061_v12 = vrot.slane %v3471_v61, 2 }
  0xab   : > { %2554 = vrot.lane.b32.xlu1 %v2553_v7, %s3007_s9  ;;  %4623 = vst [vmem:[#allocation29_spill] sm:$0xff] %v3641_v49  ;;  %v3646_v50 = vsel %vm1002_vm3, %v1281_v24, %v1283_v59  ;;  %2216 = vmatpush3.bf16.msra.mxu1 %v1738_v62  ;;  %v2588_v35 = vpack.i.bf16 %v1057_v53, %v1055_v51  ;;  %v1066_v52 = vrot.slane %v3491_v0, 2 }
  0xac   : > { %2549 = vrot.lane.b32.xlu0 %v3510_v20, %s3006_s6  ;;  %4621 = vst [vmem:[#allocation27_spill] sm:$0xff] %v3614_v43  ;;  %4624 = vst [vmem:[#allocation30_spill] sm:$0xff] %v3646_v50  ;;  %v1020_v41 = vsel %vm1002_vm3, %v1018_v4, %v1019_v9  ;;  %v1022_v31 = vsel %vm1002_vm3, %v1019_v9, %v1021_v10  ;;  %v1062_v19 = vsel %vm1002_vm3, %v1059_v11, %v1061_v12 }
  0xad   : > { %v3598_v42 = vpop.permute.xlu1 %2279  ;;  %v2603_v28 = vpack.i.bf16 %v1022_v31, %v1020_v41  ;;  %v1023_v4 = vrot.slane %v3201_v54, 2  ;;  %v1024_v9 = vrot.slane %v3203_v55, 2  ;;  %v1026_v10 = vrot.slane %v3325_v33, 2  ;;  %v4629_v31 = vld [vmem:[#allocation14_spill] sm:$0xff] }
  0xae   : > { %v3603_v37 = vpop.permute.xlu0 %2269 }
  0xaf   : > { %2564 = vrot.lane.b32.xlu1 %v2563_v2, %s3007_s9  ;;  %v1025_v0 = vsel %vm1002_vm3, %v1023_v4, %v1024_v9  ;;  %v1027_v59 = vsel %vm1002_vm3, %v1024_v9, %v1026_v10  ;;  %v4633_v4 = vld [vmem:[#allocation17_spill] sm:$0xff] }
  0xb0   : > { %2559 = vrot.lane.b32.xlu0 %v3589_v23, %s3007_s9  ;;  %v3733_v53 = vpack.i.bf16 %v1027_v59, %v1025_v0 }
  0xb1   : > { %v3619_v1 = vpop.permute.xlu1 %2284 }
  0xb2   : > { %4622 = vst [vmem:[#allocation28_spill] sm:$0xff] %v3619_v1  ;;  %v3624_v7 = vpop.permute.xlu0 %2274 }
  0xb3   : > { %2574 = vrot.lane.b32.xlu1 %v2563_v2, %s3008_s20  ;;  %v1058_v2 = vrot.slane %v3265_v17, 2 }
  0xb4   : > { %2569 = vrot.lane.b32.xlu0 %v3614_v43, %s3007_s9 }
  0xb5   : > { %v3636_v44 = vpop.permute.xlu1 %2294  ;;  %v1060_v21 = vsel %vm1002_vm3, %v1058_v2, %v1059_v11  ;;  %v1069_v2 = vrot.slane %v4629_v31, 2  ;;  %v4630_v11 = vld [vmem:[#allocation19_spill] sm:$0xff] }
  0xb6   : > { %v3643_v47 = vpop.permute.xlu0 %2289  ;;  %v2608_v17 = vpack.i.bf16 %v1062_v19, %v1060_v21  ;;  %v1071_v12 = vrot.slane %v4630_v11, 2  ;;  %v4631_v19 = vld [vmem:[#allocation8_spill] sm:$0xff] }
  0xb7   : > { %2584 = vrot.lane.b32.xlu1 %v2583_v48, %s3008_s20 }
  0xb8   : > { %2579 = vrot.lane.b32.xlu0 %v3614_v43, %s3008_s20  ;;  %v1072_v10 = vsel %vm1002_vm3, %v1069_v2, %v1071_v12  ;;  %v4645_v43 = vld [vmem:[#allocation7_spill] sm:$0xff] }
  0xb9   : > { %v3655_v5 = vpop.permute.xlu1 %2304  ;;  %v1034_v49 = vrot.slane %v4645_v43, 2 }
  0xba   : > { %v3660_v27 = vpop.permute.xlu0 %2299  ;;  %v2307_v43 = vunpack.i.h.bf16 %v3655_v5 }
  0xbb   : > { %2594 = vrot.lane.b32.xlu1 %v2583_v48, %s3009_s24 }
  0xbc   : > { %2589 = vrot.lane.b32.xlu0 %v2588_v35, %s3008_s20 }
  0xbd   : > { %v3664_v45 = vpop.permute.xlu1 %2314 }
  0xbe   : > { %v3668_v25 = vpop.permute.xlu0 %2309 }
  0xbf   : > { %2604 = vrot.lane.b32.xlu1 %v2603_v28, %s3009_s24 }
  0xc0   : > { %2599 = vrot.lane.b32.xlu0 %v2588_v35, %s3009_s24 }
  0xc1   : > { %v3672_v18 = vpop.permute.xlu1 %2324 }
  0xc2   : > { %4625 = vst [vmem:[#allocation31_spill] sm:$0xff] %v3672_v18  ;;  %v3674_v61 = vpop.permute.xlu0 %2319 }
  0xc3   : > { %4626 = vst [vmem:[#allocation32_spill] sm:$0xff] %v3674_v61  ;;  %2614 = vrot.lane.b32.xlu1 %v3510_v20, %s3005_s5 }
  0xc4   : > { %2609 = vrot.lane.b32.xlu0 %v2608_v17, %s3009_s24 }
  0xc5   : > { %v3679_v57 = vpop.permute.xlu1 %2334 }
  0xc6   : > { %v3681_v24 = vpop.permute.xlu0 %2329 }
  0xc7   : > { %2624 = vrot.lane.b32.xlu1 %v3519_v63, %s3005_s5 }
  0xc8   : > { %2619 = vrot.lane.b32.xlu0 %v3353_v56, %s3005_s5 }
  0xc9   : > { %v3687_v8 = vpop.permute.xlu1 %2344 }
  0xca   : > { %v3689_v34 = vpop.permute.xlu0 %2339  ;;  %v2347_v11 = vunpack.i.h.bf16 %v3687_v8  ;;  %v2346_v12 = vunpack.i.l.bf16 %v3687_v8 }
  0xcb   : > { %2634 = vrot.lane.b32.xlu1 %v3519_v63, %s3006_s6  ;;  %v1064_v63 = vrot.slane %v3263_v16, 2 }
  0xcc   : > { %2629 = vrot.lane.b32.xlu0 %v3353_v56, %s3006_s6  ;;  %v1063_v56 = vrot.slane %v3261_v15, 2  ;;  %v1411_v8 = vsel %vm170_vm0, %v4637_v22, %v2346_v12  ;;  %v4640_v12 = vld [vmem:[#allocation18_spill] sm:$0xff] }
  0xcd   : > { %v3695_v20 = vpop.permute.xlu1 %2354  ;;  %v1067_v16 = vsel %vm1002_vm3, %v1064_v63, %v1066_v52 }
  0xce   : > { %v3697_v39 = vpop.permute.xlu0 %2349  ;;  %v1065_v15 = vsel %vm1002_vm3, %v1063_v56, %v1064_v63  ;;  %v1028_v56 = vrot.slane %v4631_v19, 2  ;;  %v4632_v63 = vld [vmem:[#allocation9_spill] sm:$0xff] }
  0xcf   : > { %2644 = vrot.lane.b32.xlu1 %v3412_v38, %s3006_s6  ;;  %v3730_v33 = vpack.i.bf16 %v1067_v16, %v1065_v15  ;;  %v1029_v52 = vrot.slane %v4632_v63, 2 }
  0xd0   : > { %2639 = vrot.lane.b32.xlu0 %v3370_v46, %s3006_s6 }
  0xd1   : > { %v3703_v40 = vpop.permute.xlu1 %2364  ;;  %v1030_v16 = vsel %vm1002_vm3, %v1028_v56, %v1029_v52  ;;  %v2342_v56 = vunpack.i.h.bf16 %v3689_v34 }
  0xd2   : > { %4627 = vst [vmem:[#allocation33_spill] sm:$0xff] %v3703_v40  ;;  %v3705_v14 = vpop.permute.xlu0 %2359  ;;  %v4639_v40 = vld [vmem:[#allocation11_spill] sm:$0xff] }
  0xd3   : > { %2654 = vrot.lane.b32.xlu1 %v2588_v35, %s3007_s9  ;;  %v4628_v35 = vld [vmem:[#allocation13_spill] sm:$0xff] }
  0xd4   : > { %2649 = vrot.lane.b32.xlu0 %v2583_v48, %s3007_s9  ;;  %v1068_v41 = vrot.slane %v4628_v35, 2 }
  0xd5   : > { %v3712_v3 = vpop.permute.xlu1 %2374 }
  0xd6   : > { %v3717_v62 = vpop.permute.xlu0 %2369 }
  0xd7   : > { %2664 = vrot.lane.b32.xlu1 %v2608_v17, %s3007_s9 }
  0xd8   : > { %2659 = vrot.lane.b32.xlu0 %v2603_v28, %s3007_s9 }
  0xd9   : > { %v3723_v48 = vpop.permute.xlu1 %2384 }
  0xda   : > { %v3727_v51 = vpop.permute.xlu0 %2379 }
  0xdb   : > { %2674 = vrot.lane.b32.xlu1 %v2608_v17, %s3008_s20  ;;  %v1031_v17 = vrot.slane %v4633_v4, 2 }
  0xdc   : > { %2669 = vrot.lane.b32.xlu0 %v2603_v28, %s3008_s20  ;;  %v1070_v28 = vsel %vm1002_vm3, %v1068_v41, %v1069_v2 }
  0xdd   : > { %v3738_v21 = vpop.permute.xlu1 %2394  ;;  %v1032_v0 = vsel %vm1002_vm3, %v1029_v52, %v1031_v17  ;;  %v3759_v35 = vpack.i.bf16 %v1072_v10, %v1070_v28  ;;  %v2341_v52 = vunpack.i.l.bf16 %v3689_v34  ;;  %v4638_v34 = vld [vmem:[#allocation12_spill] sm:$0xff] }
  0xde   : > { %v3743_v9 = vpop.permute.xlu0 %2389  ;;  %v3763_v31 = vpack.i.bf16 %v1032_v0, %v1030_v16  ;;  %v4636_v16 = vld [vmem:[#allocation16_spill] sm:$0xff] }
  0xdf   : > { %2684 = vrot.lane.b32.xlu1 %v3730_v33, %s3008_s20  ;;  %v1412_v0 = vsel %vm170_vm0, %v4636_v16, %v2347_v11  ;;  %v1409_v61 = vsel %vm170_vm0, %v4639_v40, %v2341_v52  ;;  %v4641_v52 = vld [vmem:[#allocation20_spill] sm:$0xff]  ;;  %v2296_v16 = vunpack.i.l.bf16 %v3636_v44 }
  0xe0   : > { %2679 = vrot.lane.b32.xlu0 %v3733_v53, %s3008_s20 }
  0xe1   : > { %v3751_v15 = vpop.permute.xlu1 %2404  ;;  %v1391_v50 = vsel %vm170_vm0, %v4631_v19, %v2296_v16  ;;  %v2302_v19 = vunpack.i.h.bf16 %v3660_v27 }
  0xe2   : > { %4634 = vst [vmem:[#allocation13_spill] sm:$0xff] %v3751_v15  ;;  %v3755_v59 = vpop.permute.xlu0 %2399  ;;  %v1410_v15 = vsel %vm170_vm0, %v4638_v34, %v2342_v56  ;;  %v4644_v56 = vld [vmem:[#allocation6_spill] sm:$0xff] }
  0xe3   : > { %4635 = vst [vmem:[#allocation14_spill] sm:$0xff] %v3755_v59  ;;  %2694 = vrot.lane.b32.xlu1 %v3730_v33, %s3009_s24  ;;  %v1033_v1 = vrot.slane %v4644_v56, 2 }
  0xe4   : > { %2689 = vrot.lane.b32.xlu0 %v3733_v53, %s3009_s24 }
  0xe5   : > { %v3765_v41 = vpop.permute.xlu1 %2414 }
  0xe6   : > { %v3767_v2 = vpop.permute.xlu0 %2409 }
  0xe7   : > { %2704 = vrot.lane.b32.xlu1 %v3759_v35, %s3009_s24 }
  0xe8   : > { %2699 = vrot.lane.b32.xlu0 %v3763_v31, %s3009_s24 }
  0xe9   : > { %v2425_v4 = vpop.permute.xlu1 %2424 }
  0xea   : > { %v2427_v17 = vunpack.i.h.bf16 %v2425_v4  ;;  %v2426_v28 = vunpack.i.l.bf16 %v2425_v4  ;;  %v2420_v10 = vpop.permute.xlu0 %2419 }
  0xeb   : > { %v2422_v32 = vunpack.i.h.bf16 %v2420_v10  ;;  %v2421_v59 = vunpack.i.l.bf16 %v2420_v10  ;;  %2714 = vrot.lane.b32.xlu1 %v3412_v38, %s3005_s5 }
  0xec   : > { %v3788_v4 = vsel %vm1413_vm5, %v1411_v8, %v2426_v28  ;;  %v3791_v18 = vsel %vm1413_vm5, %v1412_v0, %v2427_v17  ;;  %2709 = vrot.lane.b32.xlu0 %v3370_v46, %s3005_s5  ;;  %v2297_v17 = vunpack.i.h.bf16 %v3636_v44  ;;  %v2292_v46 = vunpack.i.h.bf16 %v3643_v47 }
  0xed   : > { %v3796_v22 = vsel %vm1413_vm5, %v1409_v61, %v2421_v59  ;;  %v3799_v38 = vsel %vm1413_vm5, %v1410_v15, %v2422_v32  ;;  %v3801_v11 = vpop.permute.xlu1 %2434  ;;  %v2291_v32 = vunpack.i.l.bf16 %v3643_v47  ;;  %v4642_v61 = vld [vmem:[#allocation22_spill] sm:$0xff]  ;;  %v2377_v15 = vunpack.i.h.bf16 %v3712_v3 }
  0xee   : > { %v3805_v28 = vpop.permute.xlu0 %2429  ;;  %v2376_v59 = vunpack.i.l.bf16 %v3712_v3  ;;  %v2372_v8 = vunpack.i.h.bf16 %v3717_v62  ;;  %v2371_v44 = vunpack.i.l.bf16 %v3717_v62  ;;  %v1392_v47 = vsel %vm170_vm0, %v4632_v63, %v2297_v17 }
  0xef   : > { %2724 = vrot.lane.b32.xlu1 %v3416_v29, %s3005_s5  ;;  %v1073_v3 = vrot.slane %v4639_v40, 2  ;;  %v1390_v62 = vsel %vm170_vm0, %v3203_v55, %v2292_v46  ;;  %v1389_v56 = vsel %vm170_vm0, %v3201_v54, %v2291_v32  ;;  %v2306_v63 = vunpack.i.l.bf16 %v3655_v5 }
  0xf0   : > { %2719 = vrot.lane.b32.xlu0 %v4642_v61, %s3005_s5  ;;  %v1424_v40 = vsel %vm1413_vm5, %v1391_v50, %v2376_v59  ;;  %v1422_v55 = vsel %vm1413_vm5, %v1389_v56, %v2371_v44  ;;  %v1423_v54 = vsel %vm1413_vm5, %v1390_v62, %v2372_v8  ;;  %v2387_v5 = vunpack.i.h.bf16 %v3723_v48  ;;  %v4648_v8 = vld [vmem:[#allocation24_spill] sm:$0xff]  ;;  %v4649_v44 = vld [vmem:[#allocation10_spill] sm:$0xff] }
  0xf1   : > { %v3817_v0 = vpop.permute.xlu1 %2444  ;;  %v2382_v50 = vunpack.i.h.bf16 %v3727_v51 }
  0xf2   : > { %4643 = vst [vmem:[#allocation19_spill] sm:$0xff] %v3817_v0  ;;  %v3821_v10 = vpop.permute.xlu0 %2439  ;;  %v1074_v0 = vrot.slane %v4638_v34, 2  ;;  %v1425_v34 = vsel %vm1413_vm5, %v1392_v47, %v2377_v15  ;;  %v3863_v47 = vld [vmem:[#allocation2 + $0xa8] sm:$0xff] }
  0xf3   : > { %2734 = vrot.lane.b32.xlu1 %v3416_v29, %s3006_s6  ;;  %v2301_v29 = vunpack.i.l.bf16 %v3660_v27  ;;  %v2381_v27 = vunpack.i.l.bf16 %v3727_v51  ;;  %v1395_v62 = vsel %vm170_vm0, %v3863_v47, %v2306_v63 }
  0xf4   : > { %2729 = vrot.lane.b32.xlu0 %v4642_v61, %s3006_s6  ;;  %v2386_v61 = vunpack.i.l.bf16 %v3723_v48  ;;  %v1396_v48 = vsel %vm170_vm0, %v4649_v44, %v2307_v43 }
  0xf5   : > { %v2455_v17 = vpop.permute.xlu1 %2454  ;;  %v1429_v63 = vsel %vm1413_vm5, %v1396_v48, %v2387_v5  ;;  %v4653_v48 = vrot.slane %v4641_v52, 2  ;;  %v2332_v52 = vunpack.i.h.bf16 %v3681_v24 }
  0xf6   : > { %v2450_v16 = vpop.permute.xlu0 %2449  ;;  %v2457_v46 = vunpack.i.h.bf16 %v2455_v17  ;;  %v2456_v32 = vunpack.i.l.bf16 %v2455_v17 }
  0xf7   : > { %v2452_v23 = vunpack.i.h.bf16 %v2450_v16  ;;  %v2451_v58 = vunpack.i.l.bf16 %v2450_v16  ;;  %2744 = vrot.lane.b32.xlu1 %v3426_v13, %s3006_s6  ;;  %v2913_v16 = vld [vmem:[#allocation2 + $0x90] sm:$0xff] }
  0xf8   : > { %v3854_v15 = vsel %vm1446_vm6, %v1425_v34, %v2457_v46  ;;  %v3857_v59 = vsel %vm1446_vm6, %v1424_v40, %v2456_v32  ;;  %2739 = vrot.lane.b32.xlu0 %v4648_v8, %s3006_s6  ;;  %v2912_v40 = vld [vmem:[#allocation2 + $0x98] sm:$0xff]  ;;  %v1393_v46 = vsel %vm170_vm0, %v2913_v16, %v2301_v29  ;;  %v2337_v16 = vunpack.i.h.bf16 %v3679_v57 }
  0xf9   : > { %4646 = vst [vmem:[#allocation8_spill] sm:$0xff] %v3854_v15  ;;  %4647 = vst [vmem:[#allocation9_spill] sm:$0xff] %v3857_v59  ;;  %v3868_v56 = vsel %vm1446_vm6, %v1422_v55, %v2451_v58  ;;  %v3871_v51 = vsel %vm1446_vm6, %v1423_v54, %v2452_v23  ;;  %v2465_v34 = vpop.permute.xlu1 %2464  ;;  %v1394_v17 = vsel %vm170_vm0, %v2912_v40, %v2302_v19  ;;  %v4655_v40 = vld [vmem:[#allocation21_spill] sm:$0xff] }
  0xfa   : > { %v2460_v32 = vpop.permute.xlu0 %2459  ;;  %v2467_v43 = vunpack.i.h.bf16 %v2465_v34  ;;  %v2466_v44 = vunpack.i.l.bf16 %v2465_v34  ;;  %v1428_v15 = vsel %vm1413_vm5, %v1395_v62, %v2386_v61  ;;  %v1426_v23 = vsel %vm1413_vm5, %v1393_v46, %v2381_v27  ;;  %v4654_v62 = vld [vmem:[#allocation23_spill] sm:$0xff] }
  0xfb   : > { %v2462_v59 = vunpack.i.h.bf16 %v2460_v32  ;;  %v2461_v58 = vunpack.i.l.bf16 %v2460_v32  ;;  %2754 = vrot.lane.b32.xlu1 %v3730_v33, %s3007_s9  ;;  %v1427_v55 = vsel %vm1413_vm5, %v1394_v17, %v2382_v50  ;;  %v1035_v50 = vsel %vm1002_vm3, %v1033_v1, %v1034_v49 }
  0xfc   : > { %v3882_v19 = vsel %vm1446_vm6, %v1429_v63, %v2467_v43  ;;  %v3885_v29 = vsel %vm1446_vm6, %v1428_v15, %v2466_v44  ;;  %2749 = vrot.lane.b32.xlu0 %v3733_v53, %s3007_s9  ;;  %v4652_v27 = vrot.slane %v4640_v12, 2  ;;  %v1075_v53 = vsel %vm1002_vm3, %v1073_v3, %v1074_v0  ;;  %v2915_v3 = vld [vmem:[#allocation2 + $0x170] sm:$0xff] }
  0xfd   : > { %4650 = vst [vmem:[#allocation17_spill] sm:$0xff] %v3882_v19  ;;  %4651 = vst [vmem:[#allocation16_spill] sm:$0xff] %v3885_v29  ;;  %v3890_v54 = vsel %vm1446_vm6, %v1426_v23, %v2461_v58  ;;  %v3893_v5 = vsel %vm1446_vm6, %v1427_v55, %v2462_v59  ;;  %v3895_v33 = vpop.permute.xlu1 %2474  ;;  %v1077_v59 = vsel %vm1002_vm3, %v1074_v0, %v4653_v48  ;;  %v1041_v34 = vrot.slane %v4654_v62, 2  ;;  %v2918_v48 = vld [vmem:[#allocation2 + $0x138] sm:$0xff] }
  0xfe   : > { %v3897_v61 = vpop.permute.xlu0 %2469  ;;  %v1037_v15 = vsel %vm1002_vm3, %v1034_v49, %v4652_v27  ;;  %v1081_v17 = vrot.slane %v4655_v40, 2  ;;  %v2336_v1 = vunpack.i.l.bf16 %v3679_v57  ;;  %v2914_v49 = vld [vmem:[#allocation2 + $0x168] sm:$0xff]  ;;  %v1079_v32 = vrot.slane %v2915_v3, 2 }
  0xff   : > { %2764 = vrot.lane.b32.xlu1 %v3759_v35, %s3007_s9  ;;  %v1078_v46 = vrot.slane %v2914_v49, 2  ;;  %v2331_v0 = vunpack.i.l.bf16 %v3681_v24  ;;  %v3921_v44 = vpack.i.bf16 %v1037_v15, %v1035_v50  ;;  %v3923_v63 = vpack.i.bf16 %v1077_v59, %v1075_v53  ;;  %v2916_v50 = vld [vmem:[#allocation2 + $0xb0] sm:$0xff]  ;;  %v2917_v15 = vld [vmem:[#allocation2 + $0x140] sm:$0xff]  ;;  %v2919_v40 = vld [vmem:[#allocation2 + $0x128] sm:$0xff] }
 0x100   : > { %2759 = vrot.lane.b32.xlu0 %v3763_v31, %s3007_s9  ;;  %v2417_v58 = vunpack.i.h.bf16 %v3765_v41  ;;  %v2416_v57 = vunpack.i.l.bf16 %v3765_v41  ;;  %v2412_v23 = vunpack.i.h.bf16 %v3767_v2  ;;  %v2411_v55 = vunpack.i.l.bf16 %v3767_v2  ;;  %v2920_v49 = vld [vmem:[#allocation2 + $0x120] sm:$0xff] }
 0x101   : > { %v3915_v12 = vpop.permute.xlu1 %2484  ;;  %v1038_v24 = vrot.slane %v3863_v47, 2  ;;  %v1039_v27 = vrot.slane %v2916_v50, 2  ;;  %v1408_v53 = vsel %vm170_vm0, %v2917_v15, %v2337_v16  ;;  %v1407_v41 = vsel %vm170_vm0, %v2918_v48, %v2336_v1 }
 0x102   : > { %v3919_v43 = vpop.permute.xlu0 %2479  ;;  %v1082_v62 = vsel %vm1002_vm3, %v1079_v32, %v1081_v17  ;;  %v1406_v2 = vsel %vm170_vm0, %v2919_v40, %v2332_v52  ;;  %v1440_v19 = vsel %vm1413_vm5, %v1407_v41, %v2416_v57  ;;  %v1441_v16 = vsel %vm1413_vm5, %v1408_v53, %v2417_v58 }
 0x103   : > { %2774 = vrot.lane.b32.xlu1 %v3759_v35, %s3008_s20  ;;  %v1080_v35 = vsel %vm1002_vm3, %v1078_v46, %v1079_v32  ;;  %v1439_v46 = vsel %vm1413_vm5, %v1406_v2, %v2412_v23  ;;  %v1042_v23 = vsel %vm1002_vm3, %v1039_v27, %v1041_v34 }
 0x104   : > { %2769 = vrot.lane.b32.xlu0 %v3763_v31, %s3008_s20  ;;  %v1405_v31 = vsel %vm170_vm0, %v2920_v49, %v2331_v0  ;;  %v3964_v40 = vpack.i.bf16 %v1082_v62, %v1080_v35 }
 0x105   : > { %v2495_v59 = vpop.permute.xlu1 %2494  ;;  %v1438_v17 = vsel %vm1413_vm5, %v1405_v31, %v2411_v55  ;;  %v1040_v55 = vsel %vm1002_vm3, %v1038_v24, %v1039_v27  ;;  %v2441_v31 = vunpack.i.l.bf16 %v3821_v10 }
 0x106   : > { %v2490_v47 = vpop.permute.xlu0 %2489  ;;  %v2497_v3 = vunpack.i.h.bf16 %v2495_v59  ;;  %v2496_v50 = vunpack.i.l.bf16 %v2495_v59  ;;  %v3976_v34 = vpack.i.bf16 %v1042_v23, %v1040_v55  ;;  %v2277_v55 = vunpack.i.h.bf16 %v3624_v7 }
 0x107   : > { %v2492_v15 = vunpack.i.h.bf16 %v2490_v47  ;;  %v2491_v1 = vunpack.i.l.bf16 %v2490_v47  ;;  %2784 = vrot.lane.b32.xlu1 %v3923_v63, %s3008_s20  ;;  %v2276_v23 = vunpack.i.l.bf16 %v3624_v7  ;;  %v2356_v7 = vunpack.i.l.bf16 %v3695_v20 }
 0x108   : > { %v3947_v32 = vsel %vm1446_vm6, %v1441_v16, %v2497_v3  ;;  %v3950_v52 = vsel %vm1446_vm6, %v1440_v19, %v2496_v50  ;;  %2779 = vrot.lane.b32.xlu0 %v3921_v44, %s3008_s20 }
 0x109   : > { %v3955_v0 = vsel %vm1446_vm6, %v1438_v17, %v2491_v1  ;;  %v3958_v58 = vsel %vm1446_vm6, %v1439_v46, %v2492_v15  ;;  %v2505_v57 = vpop.permute.xlu1 %2504  ;;  %v2272_v15 = vunpack.i.h.bf16 %v3603_v37 }
 0x10a   : > { %v2500_v53 = vpop.permute.xlu0 %2499  ;;  %v2507_v48 = vunpack.i.h.bf16 %v2505_v57  ;;  %v2506_v41 = vunpack.i.l.bf16 %v2505_v57  ;;  %v2271_v57 = vunpack.i.l.bf16 %v3603_v37  ;;  %v2312_v37 = vunpack.i.h.bf16 %v3668_v25 }
 0x10b   : > { %v2502_v59 = vunpack.i.h.bf16 %v2500_v53  ;;  %v2501_v19 = vunpack.i.l.bf16 %v2500_v53  ;;  %2794 = vrot.lane.b32.xlu1 %v3923_v63, %s3009_s24  ;;  %v2317_v53 = vunpack.i.h.bf16 %v3664_v45 }
 0x10c   : > { %v3968_v2 = vsel %vm1446_vm6, %v3791_v18, %v2507_v48  ;;  %v3972_v49 = vsel %vm1446_vm6, %v3788_v4, %v2506_v41  ;;  %2789 = vrot.lane.b32.xlu0 %v3921_v44, %s3009_s24  ;;  %v2281_v18 = vunpack.i.l.bf16 %v3598_v42  ;;  %v2361_v4 = vunpack.i.l.bf16 %v3705_v14  ;;  %v2922_v48 = vld [vmem:[#allocation2 + $0x8] sm:$0xff] }
 0x10d   : > { %4656 = vst [vmem:[#allocation15_spill] sm:$0xff] %v3968_v2  ;;  %4657 = vst [vmem:[#allocation12_spill] sm:$0xff] %v3972_v49  ;;  %v3980_v24 = vsel %vm1446_vm6, %v3796_v22, %v2501_v19  ;;  %v3984_v27 = vsel %vm1446_vm6, %v3799_v38, %v2502_v59  ;;  %v3986_v35 = vpop.permute.xlu1 %2514  ;;  %v2921_v38 = vld [vmem:[#allocation2 + $0x30] sm:$0xff]  ;;  %v2316_v41 = vunpack.i.l.bf16 %v3664_v45  ;;  %v2311_v59 = vunpack.i.l.bf16 %v3668_v25  ;;  %v2926_v45 = vld [vmem:[#allocation2 + $0xe0] sm:$0xff] }
 0x10e   : > { %v3989_v62 = vpop.permute.xlu0 %2509  ;;  %v1385_v47 = vsel %vm170_vm0, %v2921_v38, %v2281_v18  ;;  %v2923_v18 = vld [vmem:[#allocation2] sm:$0xff]  ;;  %v2357_v25 = vunpack.i.h.bf16 %v3695_v20  ;;  %v2928_v20 = vld [vmem:[#allocation2 + $0xc8] sm:$0xff]  ;;  %v2431_v2 = vunpack.i.l.bf16 %v3805_v28  ;;  %v2437_v49 = vunpack.i.h.bf16 %v3801_v11 }
 0x10f   : > { %2804 = vrot.lane.b32.xlu1 %v3964_v40, %s3009_s24  ;;  %v1418_v50 = vsel %vm1413_vm5, %v1385_v47, %v2361_v4  ;;  %v1381_v4 = vsel %vm170_vm0, %v2923_v18, %v2271_v57  ;;  %v2925_v47 = vld [vmem:[#allocation2 + $0x18] sm:$0xff]  ;;  %v2352_v57 = vunpack.i.h.bf16 %v3697_v39 }
 0x110   : > { %2799 = vrot.lane.b32.xlu0 %v3976_v34, %s3009_s24  ;;  %v1451_v1 = vsel %vm1446_vm6, %v1418_v50, %v2441_v31  ;;  %v2924_v31 = vld [vmem:[#allocation2 + $0x20] sm:$0xff]  ;;  %v1383_v50 = vsel %vm170_vm0, %v2925_v47, %v2276_v23  ;;  %v2391_v23 = vunpack.i.l.bf16 %v3743_v9  ;;  %v2927_v18 = vld [vmem:[#allocation2 + $0xd8] sm:$0xff] }
 0x111   : > { %v3997_v22 = vpop.permute.xlu1 %2524  ;;  %v1384_v38 = vsel %vm170_vm0, %v2924_v31, %v2277_v55  ;;  %v2396_v55 = vunpack.i.l.bf16 %v3738_v21  ;;  %v1398_v31 = vsel %vm170_vm0, %v2928_v20, %v2312_v37  ;;  %v2929_v47 = vld [vmem:[#allocation2 + $0xc0] sm:$0xff] }
 0x112   : > { %v4000_v3 = vpop.permute.xlu0 %2519 }
 0x113   : > { %v2521_v16 = vunpack.i.l.bf16 %v4000_v3  ;;  %2814 = vrot.lane.b32.xlu1 %v3426_v13, %s3005_s5 }
 0x114   : > { %2809 = vrot.lane.b32.xlu0 %v4648_v8, %s3005_s5  ;;  %v1382_v8 = vsel %vm170_vm0, %v2922_v48, %v2272_v15  ;;  %v1400_v15 = vsel %vm170_vm0, %v2926_v45, %v2317_v53  ;;  %v2397_v48 = vunpack.i.h.bf16 %v3738_v21  ;;  %v1399_v53 = vsel %vm170_vm0, %v2927_v18, %v2316_v41 }
 0x115   : > { %v4011_v17 = vsel %vm1479_vm7, %v1451_v1, %v2521_v16  ;;  %v4013_v46 = vpop.permute.xlu1 %2534  ;;  %v2351_v1 = vunpack.i.l.bf16 %v3697_v39  ;;  %v1416_v39 = vsel %vm1413_vm5, %v1383_v50, %v2356_v7  ;;  %v2392_v21 = vunpack.i.h.bf16 %v3743_v9 }
 0x116   : > { %v4018_v13 = vpop.permute.xlu0 %2529  ;;  %v1417_v41 = vsel %vm1413_vm5, %v1384_v38, %v2357_v25  ;;  %v2477_v7 = vunpack.i.h.bf16 %v3895_v33  ;;  %v4658_v9 = vpack.i.bf16 %v3552_v30, %v3549_v6  ;;  %v1415_v50 = vsel %vm1413_vm5, %v1382_v8, %v2352_v57 }
 0x117   : > { %2824 = vrot.lane.b32.xlu1 %v3532_v60, %s3005_s5  ;;  %v1414_v37 = vsel %vm1413_vm5, %v1381_v4, %v2351_v1  ;;  %v1433_v18 = vsel %vm1413_vm5, %v1400_v15, %v2397_v48  ;;  %v2471_v4 = vunpack.i.l.bf16 %v3897_v61  ;;  %v2476_v25 = vunpack.i.l.bf16 %v3895_v33 }
 0x118   : > { %2819 = vrot.lane.b32.xlu0 %v3499_v26, %s3005_s5  ;;  %v2516_v6 = vunpack.i.l.bf16 %v3986_v35  ;;  %v1431_v8 = vsel %vm1413_vm5, %v1398_v31, %v2392_v21  ;;  %v1447_v1 = vsel %vm1446_vm6, %v1414_v37, %v2431_v2  ;;  %v1450_v15 = vsel %vm1446_vm6, %v1417_v41, %v2437_v49  ;;  %s1979_s5 = sshll.u32 %s4439_s29, 4  ;;  %s4505_s5 = int_to_ptr.vmem [resolvable:$true] %s1979_s5 }
 0x119   : > { %v4030_v19 = vpop.permute.xlu1 %2544  ;;  %v2512_v33 = vunpack.i.h.bf16 %v3989_v62  ;;  %v2511_v2 = vunpack.i.l.bf16 %v3989_v62  ;;  %v2522_v49 = vunpack.i.h.bf16 %v4000_v3  ;;  %v2537_v62 = vunpack.i.h.bf16 %v4013_v46  ;;  %p2944_p0 = scmp.lt.s32.totalorder %s4505_s5, %s2942_s11 }
 0x11a   : > { %v4035_v16 = vpop.permute.xlu0 %2539  ;;  %v2536_v3 = vunpack.i.l.bf16 %v4013_v46 }
 0x11b   : > { %2834 = vrot.lane.b32.xlu1 %v3532_v60, %s3006_s6  ;;  %v1397_v60 = vsel %vm170_vm0, %v2929_v47, %v2311_v59  ;;  %v2432_v59 = vunpack.i.h.bf16 %v3805_v28  ;;  %v2472_v28 = vunpack.i.h.bf16 %v3897_v61  ;;  %v4088_v61 = vsel %vm1446_vm6, %v1433_v18, %v2477_v7 }
 0x11c   : > { %2829 = vrot.lane.b32.xlu0 %v3499_v26, %s3006_s6  ;;  %v2436_v26 = vunpack.i.l.bf16 %v3801_v11  ;;  %v1432_v11 = vsel %vm1413_vm5, %v1399_v53, %v2396_v55  ;;  %v1430_v38 = vsel %vm1413_vm5, %v1397_v60, %v2391_v23  ;;  %v2517_v55 = vunpack.i.h.bf16 %v3986_v35 }
 0x11d   : > { %v4052_v45 = vpop.permute.xlu1 %2554  ;;  %v1448_v48 = vsel %vm1446_vm6, %v1415_v50, %v2432_v59  ;;  %v2527_v23 = vunpack.i.h.bf16 %v3997_v22  ;;  %v2526_v53 = vunpack.i.l.bf16 %v3997_v22  ;;  %v1463_v20 = vsel %vm1446_vm6, %v1430_v38, %v2471_v4 }
 0x11e   : > { %v4058_v29 = vpop.permute.xlu0 %2549  ;;  %v1449_v57 = vsel %vm1446_vm6, %v1416_v39, %v2436_v26  ;;  %v1464_v31 = vsel %vm1446_vm6, %v1431_v8, %v2472_v28  ;;  %v1465_v35 = vsel %vm1446_vm6, %v1432_v11, %v2476_v25  ;;  %v2547_v22 = vunpack.i.h.bf16 %v4030_v19 }
 0x11f   : > { %2844 = vrot.lane.b32.xlu1 %v4658_v9, %s3006_s6  ;;  %v2546_v60 = vunpack.i.l.bf16 %v4030_v19  ;;  %v1481_v39 = vsel %vm1479_vm7, %v1448_v48, %v2512_v33  ;;  %v1483_v21 = vsel %vm1479_vm7, %v1450_v15, %v2517_v55  ;;  %v2542_v26 = vunpack.i.h.bf16 %v4035_v16 }
 0x120   : > { %2839 = vrot.lane.b32.xlu0 %v3495_v36, %s3006_s6  ;;  %v2541_v41 = vunpack.i.l.bf16 %v4035_v16  ;;  %v1480_v37 = vsel %vm1479_vm7, %v1447_v1, %v2511_v2  ;;  %v1496_v46 = vsel %vm1479_vm7, %v1463_v20, %v2522_v49  ;;  %v1497_v59 = vsel %vm1479_vm7, %v1464_v31, %v2526_v53 }
 0x121   : > { %v4078_v30 = vpop.permute.xlu1 %2564  ;;  %v4120_v19 = vsel %vm1479_vm7, %v1465_v35, %v2527_v23  ;;  %v2531_v7 = vunpack.i.l.bf16 %v4018_v13  ;;  %v2557_v16 = vunpack.i.h.bf16 %v4052_v45  ;;  %v2556_v9 = vunpack.i.l.bf16 %v4052_v45 }
 0x122   : > { %v4084_v36 = vpop.permute.xlu0 %2559  ;;  %v2566_v50 = vunpack.i.l.bf16 %v4078_v30  ;;  %v1514_v18 = vsel %vm1512_vm8, %v1481_v39, %v2537_v62  ;;  %v1513_v38 = vsel %vm1512_vm8, %v1480_v37, %v2536_v3  ;;  %v1516_v4 = vsel %vm1512_vm8, %v1483_v21, %v2547_v22  ;;  %v4660_v22 = vld [vmem:[#allocation25_spill] sm:$0xff] }
 0x123   : > { %2854 = vrot.lane.b32.xlu1 %v3923_v63, %s3007_s9  ;;  %v1482_v63 = vsel %vm1479_vm7, %v1449_v57, %v2516_v6  ;;  %v1529_v6 = vsel %vm1512_vm8, %v1496_v46, %v2541_v41  ;;  %v1530_v8 = vsel %vm1512_vm8, %v1497_v59, %v2542_v26  ;;  %v2552_v45 = vunpack.i.h.bf16 %v4058_v29 }
 0x124   : > { %2849 = vrot.lane.b32.xlu0 %v3921_v44, %s3007_s9  ;;  %v1515_v28 = vsel %vm1512_vm8, %v1482_v63, %v2546_v60  ;;  %v2551_v57 = vunpack.i.l.bf16 %v4058_v29  ;;  %v2561_v48 = vunpack.i.l.bf16 %v4084_v36  ;;  %v2567_v33 = vunpack.i.h.bf16 %v4078_v30  ;;  %v4659_v30 = vld [vmem:[#allocation26_spill] sm:$0xff] }
 0x125   : > { %v2575_v47 = vpop.permute.xlu1 %2574  ;;  %v1546_v55 = vsel %vm1545_vm9, %v1513_v38, %v2556_v9  ;;  %v1547_v2 = vsel %vm1545_vm9, %v1514_v18, %v2557_v16  ;;  %v2562_v49 = vunpack.i.h.bf16 %v4084_v36  ;;  %v1548_v23 = vsel %vm1545_vm9, %v1515_v28, %v2566_v50 }
 0x126   : > { %v4108_v44 = vpop.permute.xlu0 %2569  ;;  %v2577_v1 = vunpack.i.h.bf16 %v2575_v47  ;;  %v2576_v15 = vunpack.i.l.bf16 %v2575_v47  ;;  %v1562_v3 = vsel %vm1545_vm9, %v1529_v6, %v2561_v48  ;;  %v1549_v36 = vsel %vm1545_vm9, %v1516_v4, %v2567_v33 }
 0x127   : > { %2864 = vrot.lane.b32.xlu1 %v3964_v40, %s3007_s9  ;;  %v1563_v21 = vsel %vm1545_vm9, %v1530_v8, %v2562_v49  ;;  %v2572_v26 = vunpack.i.h.bf16 %v4108_v44  ;;  %v2571_v41 = vunpack.i.l.bf16 %v4108_v44 }
 0x128   : > { %2859 = vrot.lane.b32.xlu0 %v3976_v34, %s3007_s9  ;;  %v1580_v62 = vsel %vm1578_vm10, %v1547_v2, %v2577_v1  ;;  %v1499_v1 = vsel %vm1479_vm7, %v4088_v61, %v2531_v7  ;;  %v1531_v2 = vsel %vm1512_vm8, %v4120_v19, %v2551_v57  ;;  %v4661_v7 = vld [vmem:[#allocation30_spill] sm:$0xff]  ;;  %s2937_s9 = scalar_lea.vmem %s4505_s5, 4096 }
 0x129   : > { %v2585_v11 = vpop.permute.xlu1 %2584  ;;  %v1532_v49 = vsel %vm1512_vm8, %v1499_v1, %v2552_v45  ;;  %v4664_v45 = vld [vmem:[#allocation27_spill] sm:$0xff]  ;;  %v4670_v1 = vld [vmem:[#allocation14_spill] sm:$0xff]  ;;  %p2938_p11 = scmp.ne.s32.totalorder %s4505_s5, %s2937_s9  ;;  %p2945_p1 = scmp.lt.s32.totalorder %s2943_s17, %s2937_s9 }
 0x12a   : > { %v2580_v25 = vpop.permute.xlu0 %2579  ;;  %v2587_v53 = vunpack.i.h.bf16 %v2585_v11  ;;  %v2586_v20 = vunpack.i.l.bf16 %v2585_v11 }
 0x12b   : > { %2874 = vrot.lane.b32.xlu1 %v3964_v40, %s3008_s20  ;;  %v2582_v63 = vunpack.i.h.bf16 %v2580_v25  ;;  %v2581_v47 = vunpack.i.l.bf16 %v2580_v25  ;;  %p2939_p12 = pnand %p2938_p11, %p3070_p5  ;;  %p2946_p2 = por %p2945_p1, %p2944_p0 }
 0x12c   : > { %2869 = vrot.lane.b32.xlu0 %v3976_v34, %s3008_s20  ;;  %v1579_v34 = vsel %vm1578_vm10, %v1546_v55, %v2576_v15  ;;  %v1581_v59 = vsel %vm1578_vm10, %v1548_v23, %v2586_v20  ;;  %v1582_v16 = vsel %vm1578_vm10, %v1549_v36, %v2587_v53  ;;  %v1564_v53 = vsel %vm1545_vm9, %v1531_v2, %v2571_v41  ;;  %v2932_v2 = vld [vmem:[#allocation2 + $0x48] sm:$0xff] }
 0x12d   : > { %v2595_v40 = vpop.permute.xlu1 %2594  ;;  %v1595_v28 = vsel %vm1578_vm10, %v1562_v3, %v2581_v47  ;;  %v1596_v44 = vsel %vm1578_vm10, %v1563_v21, %v2582_v63  ;;  %v1565_v20 = vsel %vm1545_vm9, %v1532_v49, %v2572_v26  ;;  %v2282_v36 = vunpack.i.h.bf16 %v3598_v42  ;;  %v4666_v26 = vld [vmem:[#allocation31_spill] sm:$0xff]  ;;  %v2933_v49 = vld [vmem:[#allocation2 + $0x110] sm:$0xff]  ;;  %p2940_p13 = pneg %p2939_p12 }
 0x12e   : > { %v2590_v31 = vpop.permute.xlu0 %2589  ;;  %v2597_v29 = vunpack.i.h.bf16 %v2595_v40  ;;  %v2596_v35 = vunpack.i.l.bf16 %v2595_v40  ;;  %v2327_v41 = vunpack.i.h.bf16 %v4666_v26  ;;  %v2362_v42 = vunpack.i.h.bf16 %v3705_v14 }
 0x12f   : > { %2884 = vrot.lane.b32.xlu1 %v4659_v30, %s3008_s20  ;;  %v2592_v4 = vunpack.i.h.bf16 %v2590_v31  ;;  %v2591_v25 = vunpack.i.l.bf16 %v2590_v31  ;;  %p2947_p3 = pnand %p2946_p2, %p2940_p13 }
 0x130   : > { %2879 = vrot.lane.b32.xlu0 %v4660_v22, %s3008_s20  ;;  %v1612_v60 = vsel %vm1611_vm11, %v1579_v34, %v2596_v35  ;;  %v1613_v39 = vsel %vm1611_vm11, %v1580_v62, %v2597_v29  ;;  %v4662_v29 = vld [vmem:[#allocation29_spill] sm:$0xff] }
 0x131   : > { %v2605_v37 = vpop.permute.xlu1 %2604  ;;  %v1644_v46 = vpack.c.bf16 %v1613_v39, %v1612_v60  ;;  %v4663_v35 = vpack.i.bf16 %v4661_v7, %v4662_v29  ;;  %v1597_v63 = vsel %vm1578_vm10, %v1564_v53, %v2591_v25  ;;  %v1598_v19 = vsel %vm1578_vm10, %v1565_v20, %v2592_v4  ;;  %v2930_v4 = vld [vmem:[#allocation2 + $0x38] sm:$0xff] }
 0x132   : > { %v2600_v9 = vpop.permute.xlu0 %2599  ;;  %v2607_v50 = vunpack.i.h.bf16 %v2605_v37  ;;  %v2606_v11 = vunpack.i.l.bf16 %v2605_v37  ;;  %v2326_v37 = vunpack.i.l.bf16 %v4666_v26  ;;  %v1386_v25 = vsel %vm170_vm0, %v2930_v4, %v2282_v36  ;;  %v2935_v20 = vld [vmem:[#allocation2 + $0xf8] sm:$0xff] }
 0x133   : > { %v2602_v18 = vunpack.i.h.bf16 %v2600_v9  ;;  %v2601_v38 = vunpack.i.l.bf16 %v2600_v9  ;;  %2894 = vrot.lane.b32.xlu1 %v4659_v30, %s3009_s24  ;;  %2179 = vmatprep.mubr.msk.bf16.mxu0 %vm1687_vm12, %v1644_v46  ;;  %v4667_v46 = vld [vmem:[#allocation32_spill] sm:$0xff]  ;;  %v4668_v9 = vld [vmem:[#allocation33_spill] sm:$0xff]  ;;  %v2487_v26 = vunpack.i.h.bf16 %v3915_v12 }
 0x134   : > { %v1614_v6 = vsel %vm1611_vm11, %v1581_v59, %v2606_v11  ;;  %v1615_v8 = vsel %vm1611_vm11, %v1582_v16, %v2607_v50  ;;  %2889 = vrot.lane.b32.xlu0 %v4660_v22, %s3009_s24  ;;  %v4665_v22 = vld [vmem:[#allocation28_spill] sm:$0xff]  ;;  %v2322_v59 = vunpack.i.h.bf16 %v4667_v46  ;;  %v2321_v16 = vunpack.i.l.bf16 %v4667_v46 }
 0x135   : > { %v1645_v15 = vpack.c.bf16 %v1615_v8, %v1614_v6  ;;  %v4172_v48 = vpop.permute.xlu1 %2614  ;;  %v1628_v33 = vsel %vm1611_vm11, %v1595_v28, %v2601_v38  ;;  %v1629_v55 = vsel %vm1611_vm11, %v1596_v44, %v2602_v18  ;;  %v2287_v60 = vunpack.i.h.bf16 %v4665_v22  ;;  %v4669_v18 = vld [vmem:[#allocation13_spill] sm:$0xff]  ;;  %v2931_v6 = vld [vmem:[#allocation2 + $0x50] sm:$0xff] }
 0x136   : > { %v2610_v23 = vpop.permute.xlu0 %2609  ;;  %v1652_v40 = vpack.c.bf16 %v1629_v55, %v1628_v33  ;;  %v2286_v21 = vunpack.i.l.bf16 %v4665_v22  ;;  %v2366_v50 = vunpack.i.l.bf16 %v4668_v9  ;;  %v2367_v11 = vunpack.i.h.bf16 %v4668_v9 }
 0x137   : > { %v2612_v31 = vunpack.i.h.bf16 %v2610_v23  ;;  %v2611_v61 = vunpack.i.l.bf16 %v2610_v23  ;;  %2904 = vrot.lane.b32.xlu1 %v4663_v35, %s3009_s24  ;;  %2180 = vmatmul.mubr.msk.bf16.vlgmr.msra.gmra.mrb[0].mxu0 %vm1687_vm12, %v1645_v15  ;;  %v2407_v38 = vunpack.i.h.bf16 %v4669_v18  ;;  %v2406_v28 = vunpack.i.l.bf16 %v4669_v18  ;;  %v4671_v35 = vld [vmem:[#allocation19_spill] sm:$0xff] }
 0x138   : > { %2899 = vrot.lane.b32.xlu0 %v4664_v45, %s3009_s24  ;;  %2195 = vmatprep.mubr.msk.bf16.mxu1 %vm1687_vm12, %v1652_v40  ;;  %v1388_v8 = vsel %vm170_vm0, %v2931_v6, %v2287_v60  ;;  %v2402_v15 = vunpack.i.h.bf16 %v4670_v1  ;;  %v2401_v33 = vunpack.i.l.bf16 %v4670_v1  ;;  %v1387_v14 = vsel %vm170_vm0, %v2932_v2, %v2286_v21  ;;  %v2934_v40 = vld [vmem:[#allocation2 + $0x108] sm:$0xff] }
 0x139   : > { %v1630_v57 = vsel %vm1611_vm11, %v1597_v63, %v2611_v61  ;;  %v1631_v47 = vsel %vm1611_vm11, %v1598_v19, %v2612_v31  ;;  %v4193_v30 = vpop.permute.xlu1 %2624  ;;  %v1404_v23 = vsel %vm170_vm0, %v2933_v49, %v2327_v41  ;;  %v1403_v53 = vsel %vm170_vm0, %v2934_v40, %v2326_v37  ;;  %v2936_v61 = vld [vmem:[#allocation2 + $0xf0] sm:$0xff] }
 0x13a   : > { %v1653_v34 = vpack.c.bf16 %v1631_v47, %v1630_v57  ;;  %v4195_v62 = vpop.permute.xlu0 %2619  ;;  %v1402_v31 = vsel %vm170_vm0, %v2935_v20, %v2322_v59  ;;  %v1401_v7 = vsel %vm170_vm0, %v2936_v61, %v2321_v16  ;;  %v1420_v29 = vsel %vm1413_vm5, %v1387_v14, %v2366_v50 }
 0x13b   : > { %v2447_v63 = vunpack.i.h.bf16 %v4671_v35  ;;  %v2446_v19 = vunpack.i.l.bf16 %v4671_v35  ;;  %v1421_v45 = vsel %vm1413_vm5, %v1388_v8, %v2367_v11  ;;  %v1419_v57 = vsel %vm1413_vm5, %v1386_v25, %v2362_v42 }
 0x13c   : > { %2196 = vmatmul.mubr.msk.bf16.vlgmr.msra.gmra.mrb[0].mxu1 %vm1687_vm12, %v1653_v34  ;;  %v1436_v47 = vsel %vm1413_vm5, %v1403_v53, %v2406_v28  ;;  %v1437_v34 = vsel %vm1413_vm5, %v1404_v23, %v2407_v38  ;;  %v1434_v22 = vsel %vm1413_vm5, %v1401_v7, %v2401_v33  ;;  %v1435_v60 = vsel %vm1413_vm5, %v1402_v31, %v2402_v15 }
 0x13d   : > { %v4198_v3 = vpop.permute.xlu1 %2634  ;;  %v2442_v21 = vunpack.i.h.bf16 %v3821_v10  ;;  %v2482_v37 = vunpack.i.h.bf16 %v3919_v43  ;;  %v2481_v46 = vunpack.i.l.bf16 %v3919_v43  ;;  %v2486_v59 = vunpack.i.l.bf16 %v3915_v12 }
 0x13e   : > { %v4202_v39 = vpop.permute.xlu0 %2629  ;;  %v2532_v16 = vunpack.i.h.bf16 %v4018_v13  ;;  %v1454_v9 = vsel %vm1446_vm6, %v1421_v45, %v2447_v63  ;;  %v1453_v50 = vsel %vm1446_vm6, %v1420_v29, %v2446_v19  ;;  %v2617_v11 = vunpack.i.h.bf16 %v4172_v48 }
 0x13f   : > { %v2616_v42 = vunpack.i.l.bf16 %v4172_v48  ;;  %v2622_v10 = vunpack.i.h.bf16 %v4195_v62  ;;  %v2621_v18 = vunpack.i.l.bf16 %v4195_v62  ;;  %v2627_v38 = vunpack.i.h.bf16 %v4193_v30 }
 0x140   : > { %v2626_v43 = vunpack.i.l.bf16 %v4193_v30  ;;  %v1452_v12 = vsel %vm1446_vm6, %v1419_v57, %v2442_v21  ;;  %v1470_v13 = vsel %vm1446_vm6, %v1437_v34, %v2487_v26  ;;  %v2637_v4 = vunpack.i.h.bf16 %v4198_v3 }
 0x141   : > { %v4214_v44 = vpop.permute.xlu1 %2644  ;;  %v2636_v25 = vunpack.i.l.bf16 %v4198_v3  ;;  %v1467_v48 = vsel %vm1446_vm6, %v1434_v22, %v2481_v46  ;;  %v1468_v8 = vsel %vm1446_vm6, %v1435_v60, %v2482_v37  ;;  %v1469_v62 = vsel %vm1446_vm6, %v1436_v47, %v2486_v59 }
 0x142   : > { %v4220_v55 = vpop.permute.xlu0 %2639  ;;  %v1485_v1 = vsel %vm1479_vm7, %v1452_v12, %v2532_v16  ;;  %v1501_v30 = vsel %vm1479_vm7, %v1468_v8, %v2617_v11  ;;  %v1500_v15 = vsel %vm1479_vm7, %v1467_v48, %v2616_v42  ;;  %v2632_v33 = vunpack.i.h.bf16 %v4202_v39 }
 0x143   : > { %v2631_v2 = vunpack.i.l.bf16 %v4202_v39  ;;  %v1486_v3 = vsel %vm1479_vm7, %v1453_v50, %v2621_v18  ;;  %v1487_v14 = vsel %vm1479_vm7, %v1454_v9, %v2622_v10  ;;  %v1502_v49 = vsel %vm1479_vm7, %v1469_v62, %v2626_v43 }
 0x144   : > { %v1503_v23 = vsel %vm1479_vm7, %v1470_v13, %v2627_v38  ;;  %v1533_v53 = vsel %vm1512_vm8, %v1500_v15, %v2636_v25  ;;  %v1534_v20 = vsel %vm1512_vm8, %v1501_v30, %v2637_v4  ;;  %v2647_v31 = vunpack.i.h.bf16 %v4214_v44 }
 0x145   : > { %v4234_v36 = vpop.permute.xlu1 %2654  ;;  %v2646_v61 = vunpack.i.l.bf16 %v4214_v44  ;;  %v2642_v39 = vunpack.i.h.bf16 %v4220_v55  ;;  %v2641_v29 = vunpack.i.l.bf16 %v4220_v55  ;;  %v1517_v19 = vsel %vm1512_vm8, %v4011_v17, %v2631_v2 }
 0x146   : > { %v2650_v41 = vpop.permute.xlu0 %2649  ;;  %v2657_v35 = vunpack.i.h.bf16 %v4234_v36  ;;  %v2656_v63 = vunpack.i.l.bf16 %v4234_v36  ;;  %v1518_v45 = vsel %vm1512_vm8, %v1485_v1, %v2632_v33  ;;  %v1536_v55 = vsel %vm1512_vm8, %v1503_v23, %v2647_v31 }
 0x147   : > { %v2652_v57 = vunpack.i.h.bf16 %v2650_v41  ;;  %v2651_v47 = vunpack.i.l.bf16 %v2650_v41  ;;  %v1535_v26 = vsel %vm1512_vm8, %v1502_v49, %v2646_v61  ;;  %v1519_v36 = vsel %vm1512_vm8, %v1486_v3, %v2641_v29 }
 0x148   : > { %v1520_v17 = vsel %vm1512_vm8, %v1487_v14, %v2642_v39  ;;  %v1566_v16 = vsel %vm1545_vm9, %v1533_v53, %v2656_v63  ;;  %v1567_v41 = vsel %vm1545_vm9, %v1534_v20, %v2657_v35 }
 0x149   : > { %v2665_v28 = vpop.permute.xlu1 %2664  ;;  %v1550_v9 = vsel %vm1545_vm9, %v1517_v19, %v2651_v47  ;;  %v1551_v50 = vsel %vm1545_vm9, %v1518_v45, %v2652_v57 }
 0x14a   : > { %v4256_v6 = vpop.permute.xlu0 %2659  ;;  %v2667_v34 = vunpack.i.h.bf16 %v2665_v28  ;;  %v2666_v22 = vunpack.i.l.bf16 %v2665_v28 }
 0x14b   : > { %v2662_v11 = vunpack.i.h.bf16 %v4256_v6  ;;  %v2661_v42 = vunpack.i.l.bf16 %v4256_v6 }
 0x14c   : > { %v1568_v10 = vsel %vm1545_vm9, %v1535_v26, %v2666_v22  ;;  %v1569_v18 = vsel %vm1545_vm9, %v1536_v55, %v2667_v34 }
 0x14d   : > { %v2675_v40 = vpop.permute.xlu1 %2674  ;;  %v1552_v3 = vsel %vm1545_vm9, %v1519_v36, %v2661_v42  ;;  %v1553_v53 = vsel %vm1545_vm9, %v1520_v17, %v2662_v11 }
 0x14e   : > { %v2670_v7 = vpop.permute.xlu0 %2669  ;;  %v2677_v60 = vunpack.i.h.bf16 %v2675_v40  ;;  %v2676_v44 = vunpack.i.l.bf16 %v2675_v40 }
 0x14f   : > { %v2672_v37 = vunpack.i.h.bf16 %v2670_v7  ;;  %v2671_v46 = vunpack.i.l.bf16 %v2670_v7 }
 0x150   : > { %v1599_v38 = vsel %vm1578_vm10, %v1566_v16, %v2676_v44  ;;  %v1600_v43 = vsel %vm1578_vm10, %v1567_v41, %v2677_v60 }
 0x151   : > { %v2685_v21 = vpop.permute.xlu1 %2684  ;;  %v1583_v12 = vsel %vm1578_vm10, %v1550_v9, %v2671_v46  ;;  %v1584_v13 = vsel %vm1578_vm10, %v1551_v50, %v2672_v37 }
 0x152   : > { %v2680_v59 = vpop.permute.xlu0 %2679  ;;  %v2687_v8 = vunpack.i.h.bf16 %v2685_v21  ;;  %v2686_v62 = vunpack.i.l.bf16 %v2685_v21 }
 0x153   : > { %v2682_v30 = vunpack.i.h.bf16 %v2680_v59  ;;  %v2681_v15 = vunpack.i.l.bf16 %v2680_v59 }
 0x154   : > { %v1601_v39 = vsel %vm1578_vm10, %v1568_v10, %v2686_v62  ;;  %v1602_v29 = vsel %vm1578_vm10, %v1569_v18, %v2687_v8 }
 0x155   : > { %v2695_v28 = vpop.permute.xlu1 %2694  ;;  %v1585_v19 = vsel %vm1578_vm10, %v1552_v3, %v2681_v15  ;;  %v1586_v45 = vsel %vm1578_vm10, %v1553_v53, %v2682_v30  ;;  %v4672_v30 = vld [vmem:[#allocation9_spill] sm:$0xff] }
 0x156   : > { %v2690_v4 = vpop.permute.xlu0 %2689  ;;  %v2697_v25 = vunpack.i.h.bf16 %v2695_v28  ;;  %v2696_v48 = vunpack.i.l.bf16 %v2695_v28 }
 0x157   : > { %v2692_v1 = vunpack.i.h.bf16 %v2690_v4  ;;  %v2691_v6 = vunpack.i.l.bf16 %v2690_v4 }
 0x158   : > { %v1632_v33 = vsel %vm1611_vm11, %v1599_v38, %v2696_v48  ;;  %v1633_v2 = vsel %vm1611_vm11, %v1600_v43, %v2697_v25 }
 0x159   : > { %v1616_v14 = vsel %vm1611_vm11, %v1583_v12, %v2691_v6  ;;  %v1617_v49 = vsel %vm1611_vm11, %v1584_v13, %v2692_v1  ;;  %v1654_v23 = vpack.c.bf16 %v1633_v2, %v1632_v33  ;;  %v2705_v40 = vpop.permute.xlu1 %2704  ;;  %v4673_v33 = vld [vmem:[#allocation8_spill] sm:$0xff] }
 0x15a   : > { %v1646_v20 = vpack.c.bf16 %v1617_v49, %v1616_v14  ;;  %v2700_v31 = vpop.permute.xlu0 %2699  ;;  %v2707_v61 = vunpack.i.h.bf16 %v2705_v40  ;;  %v2706_v7 = vunpack.i.l.bf16 %v2705_v40 }
 0x15b   : > { %v2702_v35 = vunpack.i.h.bf16 %v2700_v31  ;;  %v2701_v63 = vunpack.i.l.bf16 %v2700_v31  ;;  %2199 = vmatprep.mubr.msk.bf16.mxu1 %vm1687_vm12, %v1654_v23 }
 0x15c   : > { %v1634_v57 = vsel %vm1611_vm11, %v1601_v39, %v2706_v7  ;;  %v1635_v47 = vsel %vm1611_vm11, %v1602_v29, %v2707_v61  ;;  %2183 = vmatprep.mubr.msk.bf16.mxu0 %vm1687_vm12, %v1646_v20 }
 0x15d   : > { %v1618_v34 = vsel %vm1611_vm11, %v1585_v19, %v2701_v63  ;;  %v1619_v22 = vsel %vm1611_vm11, %v1586_v45, %v2702_v35  ;;  %v1655_v60 = vpack.c.bf16 %v1635_v47, %v1634_v57  ;;  %v2715_v44 = vpop.permute.xlu1 %2714 }
 0x15e   : > { %v1647_v21 = vpack.c.bf16 %v1619_v22, %v1618_v34  ;;  %v2710_v26 = vpop.permute.xlu0 %2709  ;;  %v2717_v9 = vunpack.i.h.bf16 %v2715_v44  ;;  %v2716_v50 = vunpack.i.l.bf16 %v2715_v44 }
 0x15f   : > { %2200 = vmatmul.mubr.msk.bf16.gmra.mrb[4].mxu1 %vm1687_vm12, %v1655_v60  ;;  %v2712_v11 = vunpack.i.h.bf16 %v2710_v26  ;;  %v2711_v42 = vunpack.i.l.bf16 %v2710_v26 }
 0x160   : > { %2184 = vmatmul.mubr.msk.bf16.gmra.mrb[4].mxu0 %vm1687_vm12, %v1647_v21  ;;  %v1505_v25 = vsel %vm1479_vm7, %v3958_v58, %v2717_v9  ;;  %v1504_v48 = vsel %vm1479_vm7, %v3955_v0, %v2716_v50 }
 0x161   : > { %v2725_v55 = vpop.permute.xlu1 %2724  ;;  %v1489_v8 = vsel %vm1479_vm7, %v3871_v51, %v2712_v11  ;;  %v1488_v62 = vsel %vm1479_vm7, %v3868_v56, %v2711_v42 }
 0x162   : > { %v2720_v37 = vpop.permute.xlu0 %2719  ;;  %v2727_v38 = vunpack.i.h.bf16 %v2725_v55  ;;  %v2726_v43 = vunpack.i.l.bf16 %v2725_v55 }
 0x163   : > { %v2722_v10 = vunpack.i.h.bf16 %v2720_v37  ;;  %v2721_v18 = vunpack.i.l.bf16 %v2720_v37 }
 0x164   : > { %v1506_v58 = vsel %vm1479_vm7, %v3950_v52, %v2726_v43  ;;  %v1507_v0 = vsel %vm1479_vm7, %v3947_v32, %v2727_v38 }
 0x165   : > { %v2735_v46 = vpop.permute.xlu1 %2734  ;;  %v1490_v15 = vsel %vm1479_vm7, %v4672_v30, %v2721_v18  ;;  %v1491_v2 = vsel %vm1479_vm7, %v4673_v33, %v2722_v10 }
 0x166   : > { %v2730_v59 = vpop.permute.xlu0 %2729  ;;  %v2737_v12 = vunpack.i.h.bf16 %v2735_v46  ;;  %v2736_v13 = vunpack.i.l.bf16 %v2735_v46 }
 0x167   : > { %v2732_v1 = vunpack.i.h.bf16 %v2730_v59  ;;  %v2731_v6 = vunpack.i.l.bf16 %v2730_v59 }
 0x168   : > { %v1537_v51 = vsel %vm1512_vm8, %v1504_v48, %v2736_v13  ;;  %v1538_v14 = vsel %vm1512_vm8, %v1505_v25, %v2737_v12 }
 0x169   : > { %v2745_v36 = vpop.permute.xlu1 %2744  ;;  %v1521_v61 = vsel %vm1512_vm8, %v1488_v62, %v2731_v6  ;;  %v1522_v7 = vsel %vm1512_vm8, %v1489_v8, %v2732_v1 }
 0x16a   : > { %v2740_v17 = vpop.permute.xlu0 %2739  ;;  %v2747_v56 = vunpack.i.h.bf16 %v2745_v36  ;;  %v2746_v49 = vunpack.i.l.bf16 %v2745_v36 }
 0x16b   : > { %v2742_v40 = vunpack.i.h.bf16 %v2740_v17  ;;  %v2741_v53 = vunpack.i.l.bf16 %v2740_v17 }
 0x16c   : > { %v1539_v45 = vsel %vm1512_vm8, %v1506_v58, %v2746_v49  ;;  %v1540_v57 = vsel %vm1512_vm8, %v1507_v0, %v2747_v56 }
 0x16d   : > { %v2755_v16 = vpop.permute.xlu1 %2754  ;;  %v1523_v60 = vsel %vm1512_vm8, %v1490_v15, %v2741_v53  ;;  %v1524_v44 = vsel %vm1512_vm8, %v1491_v2, %v2742_v40 }
 0x16e   : > { %v2750_v41 = vpop.permute.xlu0 %2749  ;;  %v2757_v20 = vunpack.i.h.bf16 %v2755_v16  ;;  %v2756_v31 = vunpack.i.l.bf16 %v2755_v16 }
 0x16f   : > { %v2752_v52 = vunpack.i.h.bf16 %v2750_v41  ;;  %v2751_v39 = vunpack.i.l.bf16 %v2750_v41 }
 0x170   : > { %v1570_v21 = vsel %vm1545_vm9, %v1537_v51, %v2756_v31  ;;  %v1571_v26 = vsel %vm1545_vm9, %v1538_v14, %v2757_v20 }
 0x171   : > { %v2765_v28 = vpop.permute.xlu1 %2764  ;;  %v1554_v55 = vsel %vm1545_vm9, %v1521_v61, %v2751_v39  ;;  %v1555_v37 = vsel %vm1545_vm9, %v1522_v7, %v2752_v52 }
 0x172   : > { %v4315_v4 = vpop.permute.xlu0 %2759  ;;  %v2767_v29 = vunpack.i.h.bf16 %v2765_v28  ;;  %v2766_v32 = vunpack.i.l.bf16 %v2765_v28 }
 0x173   : > { %v2762_v46 = vunpack.i.h.bf16 %v4315_v4  ;;  %v2761_v59 = vunpack.i.l.bf16 %v4315_v4 }
 0x174   : > { %v1572_v36 = vsel %vm1545_vm9, %v1539_v45, %v2766_v32  ;;  %v1573_v17 = vsel %vm1545_vm9, %v1540_v57, %v2767_v29 }
 0x175   : > { %v2775_v3 = vpop.permute.xlu1 %2774  ;;  %v1556_v8 = vsel %vm1545_vm9, %v1523_v60, %v2761_v59  ;;  %v1557_v15 = vsel %vm1545_vm9, %v1524_v44, %v2762_v46 }
 0x176   : > { %v2770_v23 = vpop.permute.xlu0 %2769  ;;  %v2777_v35 = vunpack.i.h.bf16 %v2775_v3  ;;  %v2776_v63 = vunpack.i.l.bf16 %v2775_v3 }
 0x177   : > { %v2772_v47 = vunpack.i.h.bf16 %v2770_v23  ;;  %v2771_v34 = vunpack.i.l.bf16 %v2770_v23 }
 0x178   : > { %v1603_v16 = vsel %vm1578_vm10, %v1570_v21, %v2776_v63  ;;  %v1604_v41 = vsel %vm1578_vm10, %v1571_v26, %v2777_v35 }
 0x179   : > { %v2785_v19 = vpop.permute.xlu1 %2784  ;;  %v1587_v50 = vsel %vm1578_vm10, %v1554_v55, %v2771_v34  ;;  %v1588_v11 = vsel %vm1578_vm10, %v1555_v37, %v2772_v47 }
 0x17a   : > { %v2780_v22 = vpop.permute.xlu0 %2779  ;;  %v2787_v38 = vunpack.i.h.bf16 %v2785_v19  ;;  %v2786_v43 = vunpack.i.l.bf16 %v2785_v19 }
 0x17b   : > { %v2782_v13 = vunpack.i.h.bf16 %v2780_v22  ;;  %v2781_v4 = vunpack.i.l.bf16 %v2780_v22 }
 0x17c   : > { %v1605_v3 = vsel %vm1578_vm10, %v1572_v36, %v2786_v43  ;;  %v1606_v51 = vsel %vm1578_vm10, %v1573_v17, %v2787_v38  ;;  %v4675_v38 = vld [vmem:[#allocation17_spill] sm:$0xff] }
 0x17d   : > { %v2795_v9 = vpop.permute.xlu1 %2794  ;;  %v1589_v49 = vsel %vm1578_vm10, %v1556_v8, %v2781_v4  ;;  %v1590_v23 = vsel %vm1578_vm10, %v1557_v15, %v2782_v13 }
 0x17e   : > { %v2790_v42 = vpop.permute.xlu0 %2789  ;;  %v2797_v10 = vunpack.i.h.bf16 %v2795_v9  ;;  %v2796_v18 = vunpack.i.l.bf16 %v2795_v9 }
 0x17f   : > { %v2792_v28 = vunpack.i.h.bf16 %v2790_v42  ;;  %v2791_v12 = vunpack.i.l.bf16 %v2790_v42 }
 0x180   : > { %v1636_v25 = vsel %vm1611_vm11, %v1603_v16, %v2796_v18  ;;  %v1637_v48 = vsel %vm1611_vm11, %v1604_v41, %v2797_v10  ;;  %v4674_v10 = vld [vmem:[#allocation16_spill] sm:$0xff] }
 0x181   : > { %v1620_v62 = vsel %vm1611_vm11, %v1587_v50, %v2791_v12  ;;  %v1621_v1 = vsel %vm1611_vm11, %v1588_v11, %v2792_v28  ;;  %v1656_v6 = vpack.c.bf16 %v1637_v48, %v1636_v25  ;;  %v2805_v30 = vpop.permute.xlu1 %2804  ;;  %v4676_v28 = vld [vmem:[#allocation12_spill] sm:$0xff]  ;;  %v4677_v12 = vld [vmem:[#allocation15_spill] sm:$0xff] }
 0x182   : > { %v1648_v33 = vpack.c.bf16 %v1621_v1, %v1620_v62  ;;  %v2800_v2 = vpop.permute.xlu0 %2799  ;;  %v2807_v58 = vunpack.i.h.bf16 %v2805_v30  ;;  %v2806_v0 = vunpack.i.l.bf16 %v2805_v30 }
 0x183   : > { %v2802_v14 = vunpack.i.h.bf16 %v2800_v2  ;;  %v2801_v56 = vunpack.i.l.bf16 %v2800_v2  ;;  %2203 = vmatprep.mubr.msk.bf16.mxu1 %vm1687_vm12, %v1656_v6 }
 0x184   : > { %v1638_v40 = vsel %vm1611_vm11, %v1605_v3, %v2806_v0  ;;  %v1639_v53 = vsel %vm1611_vm11, %v1606_v51, %v2807_v58  ;;  %2187 = vmatprep.mubr.msk.bf16.mxu0 %vm1687_vm12, %v1648_v33 }
 0x185   : > { %v1622_v20 = vsel %vm1611_vm11, %v1589_v49, %v2801_v56  ;;  %v1623_v31 = vsel %vm1611_vm11, %v1590_v23, %v2802_v14  ;;  %v1657_v61 = vpack.c.bf16 %v1639_v53, %v1638_v40  ;;  %v2815_v7 = vpop.permute.xlu1 %2814 }
 0x186   : > { %v1649_v52 = vpack.c.bf16 %v1623_v31, %v1622_v20  ;;  %v2810_v39 = vpop.permute.xlu0 %2809  ;;  %v2817_v34 = vunpack.i.h.bf16 %v2815_v7  ;;  %v2816_v22 = vunpack.i.l.bf16 %v2815_v7 }
 0x187   : > { %2204 = vmatmul.mubr.msk.bf16.gmra.mrb[8].mxu1 %vm1687_vm12, %v1657_v61  ;;  %v2812_v60 = vunpack.i.h.bf16 %v2810_v39  ;;  %v2811_v44 = vunpack.i.l.bf16 %v2810_v39 }
 0x188   : > { %2188 = vmatmul.mubr.msk.bf16.gmra.mrb[8].mxu0 %vm1687_vm12, %v1649_v52  ;;  %v1509_v16 = vsel %vm1479_vm7, %v3984_v27, %v2817_v34  ;;  %v1508_v41 = vsel %vm1479_vm7, %v3980_v24, %v2816_v22 }
 0x189   : > { %v2825_v29 = vpop.permute.xlu1 %2824  ;;  %v1493_v9 = vsel %vm1479_vm7, %v3893_v5, %v2812_v60  ;;  %v1492_v50 = vsel %vm1479_vm7, %v3890_v54, %v2811_v44 }
 0x18a   : > { %v2820_v32 = vpop.permute.xlu0 %2819  ;;  %v2827_v55 = vunpack.i.h.bf16 %v2825_v29  ;;  %v2826_v37 = vunpack.i.l.bf16 %v2825_v29 }
 0x18b   : > { %v2822_v21 = vunpack.i.h.bf16 %v2820_v32  ;;  %v2821_v26 = vunpack.i.l.bf16 %v2820_v32 }
 0x18c   : > { %v1510_v27 = vsel %vm1479_vm7, %v4676_v28, %v2826_v37  ;;  %v1511_v24 = vsel %vm1479_vm7, %v4677_v12, %v2827_v55 }
 0x18d   : > { %v2835_v35 = vpop.permute.xlu1 %2834  ;;  %v1494_v18 = vsel %vm1479_vm7, %v4674_v10, %v2821_v26  ;;  %v1495_v43 = vsel %vm1479_vm7, %v4675_v38, %v2822_v21 }
 0x18e   : > { %v2830_v63 = vpop.permute.xlu0 %2829  ;;  %v2837_v59 = vunpack.i.h.bf16 %v2835_v35  ;;  %v2836_v36 = vunpack.i.l.bf16 %v2835_v35 }
 0x18f   : > { %v2832_v11 = vunpack.i.h.bf16 %v2830_v63  ;;  %v2831_v42 = vunpack.i.l.bf16 %v2830_v63 }
 0x190   : > { %v1541_v5 = vsel %vm1512_vm8, %v1508_v41, %v2836_v36  ;;  %v1542_v4 = vsel %vm1512_vm8, %v1509_v16, %v2837_v59 }
 0x191   : > { %v2845_v19 = vpop.permute.xlu1 %2844  ;;  %v1525_v30 = vsel %vm1512_vm8, %v1492_v50, %v2831_v42  ;;  %v1526_v15 = vsel %vm1512_vm8, %v1493_v9, %v2832_v11 }
 0x192   : > { %v2840_v45 = vpop.permute.xlu0 %2839  ;;  %v2847_v54 = vunpack.i.h.bf16 %v2845_v19  ;;  %v2846_v25 = vunpack.i.l.bf16 %v2845_v19 }
 0x193   : > { %v2842_v8 = vunpack.i.h.bf16 %v2840_v45  ;;  %v2841_v62 = vunpack.i.l.bf16 %v2840_v45 }
 0x194   : > { %v1543_v56 = vsel %vm1512_vm8, %v1510_v27, %v2846_v25  ;;  %v1544_v49 = vsel %vm1512_vm8, %v1511_v24, %v2847_v54 }
 0x195   : > { %v2855_v57 = vpop.permute.xlu1 %2854  ;;  %v1527_v20 = vsel %vm1512_vm8, %v1494_v18, %v2841_v62  ;;  %v1528_v31 = vsel %vm1512_vm8, %v1495_v43, %v2842_v8 }
 0x196   : > { %v2850_v47 = vpop.permute.xlu0 %2849  ;;  %v2857_v1 = vunpack.i.h.bf16 %v2855_v57  ;;  %v2856_v6 = vunpack.i.l.bf16 %v2855_v57 }
 0x197   : > { %v2852_v33 = vunpack.i.h.bf16 %v2850_v47  ;;  %v2851_v2 = vunpack.i.l.bf16 %v2850_v47 }
 0x198   : > { %v1574_v61 = vsel %vm1545_vm9, %v1541_v5, %v2856_v6  ;;  %v1575_v7 = vsel %vm1545_vm9, %v1542_v4, %v2857_v1  ;;  %v4431_v1 = vld [vmem:[%s4556_s2] ss:$0 sm:$0xff] }
 0x199   : > { %v2865_v46 = vpop.permute.xlu1 %2864  ;;  %v1558_v52 = vsel %vm1545_vm9, %v1525_v30, %v2851_v2  ;;  %v1559_v39 = vsel %vm1545_vm9, %v1526_v15, %v2852_v33 }
 0x19a   : > { %v4371_v17 = vpop.permute.xlu0 %2859  ;;  %v2867_v58 = vunpack.i.h.bf16 %v2865_v46  ;;  %v2866_v0 = vunpack.i.l.bf16 %v2865_v46 }
 0x19b   : > { %v2862_v29 = vunpack.i.h.bf16 %v4371_v17  ;;  %v2861_v32 = vunpack.i.l.bf16 %v4371_v17 }
 0x19c   : > { %v1576_v35 = vsel %vm1545_vm9, %v1543_v56, %v2866_v0  ;;  %v1577_v63 = vsel %vm1545_vm9, %v1544_v49, %v2867_v58 }
 0x19d   : > { %v2875_v13 = vpop.permute.xlu1 %2874  ;;  %v1560_v16 = vsel %vm1545_vm9, %v1527_v20, %v2861_v32  ;;  %v1561_v42 = vsel %vm1545_vm9, %v1528_v31, %v2862_v29 }
 0x19e   : > { %v2870_v48 = vpop.permute.xlu0 %2869  ;;  %v2877_v3 = vunpack.i.h.bf16 %v2875_v13  ;;  %v2876_v51 = vunpack.i.l.bf16 %v2875_v13 }
 0x19f   : > { %v2872_v23 = vunpack.i.h.bf16 %v2870_v48  ;;  %v2871_v40 = vunpack.i.l.bf16 %v2870_v48 }
 0x1a0   : > { %v1607_v19 = vsel %vm1578_vm10, %v1574_v61, %v2876_v51  ;;  %v1608_v45 = vsel %vm1578_vm10, %v1575_v7, %v2877_v3 }
 0x1a1   : > { %v2885_v14 = vpop.permute.xlu1 %2884  ;;  %v1591_v47 = vsel %vm1578_vm10, %v1558_v52, %v2871_v40  ;;  %v1592_v34 = vsel %vm1578_vm10, %v1559_v39, %v2872_v23 }
 0x1a2   : > { %v2880_v53 = vpop.permute.xlu0 %2879  ;;  %v2887_v21 = vunpack.i.h.bf16 %v2885_v14  ;;  %v2886_v26 = vunpack.i.l.bf16 %v2885_v14 }
 0x1a3   : > { %v2882_v46 = vunpack.i.h.bf16 %v2880_v53  ;;  %v2881_v59 = vunpack.i.l.bf16 %v2880_v53 }
 0x1a4   : > { %v1609_v28 = vsel %vm1578_vm10, %v1576_v35, %v2886_v26  ;;  %v1610_v27 = vsel %vm1578_vm10, %v1577_v63, %v2887_v21 }
 0x1a5   : > { %v2895_v57 = vpop.permute.xlu1 %2894  ;;  %v1593_v13 = vsel %vm1578_vm10, %v1560_v16, %v2881_v59  ;;  %v1594_v5 = vsel %vm1578_vm10, %v1561_v42, %v2882_v46 }
 0x1a6   : > { %v2890_v22 = vpop.permute.xlu0 %2889  ;;  %v2897_v60 = vunpack.i.h.bf16 %v2895_v57  ;;  %v2896_v44 = vunpack.i.l.bf16 %v2895_v57 }
 0x1a7   : > { %v2892_v55 = vunpack.i.h.bf16 %v2890_v22  ;;  %v2891_v37 = vunpack.i.l.bf16 %v2890_v22 }
 0x1a8   : > { %v1640_v36 = vsel %vm1611_vm11, %v1607_v19, %v2896_v44  ;;  %v1641_v17 = vsel %vm1611_vm11, %v1608_v45, %v2897_v60 }
 0x1a9   : > { %v1624_v41 = vsel %vm1611_vm11, %v1591_v47, %v2891_v37  ;;  %v1625_v9 = vsel %vm1611_vm11, %v1592_v34, %v2892_v55  ;;  %v1658_v50 = vpack.c.bf16 %v1641_v17, %v1640_v36  ;;  %v2905_v11 = vpop.permute.xlu1 %2904 }
 0x1aa   : > { %v1650_v10 = vpack.c.bf16 %v1625_v9, %v1624_v41  ;;  %v2900_v18 = vpop.permute.xlu0 %2899  ;;  %v2907_v38 = vunpack.i.h.bf16 %v2905_v11  ;;  %v2906_v43 = vunpack.i.l.bf16 %v2905_v11 }
 0x1ab   : > { %v2902_v12 = vunpack.i.h.bf16 %v2900_v18  ;;  %v2901_v24 = vunpack.i.l.bf16 %v2900_v18  ;;  %2207 = vmatprep.mubr.msk.bf16.mxu1 %vm1687_vm12, %v1658_v50 }
 0x1ac   : > { %v1642_v4 = vsel %vm1611_vm11, %v1609_v28, %v2906_v43  ;;  %v1643_v54 = vsel %vm1611_vm11, %v1610_v27, %v2907_v38  ;;  %2191 = vmatprep.mubr.msk.bf16.mxu0 %vm1687_vm12, %v1650_v10 }
 0x1ad   : > { %v1626_v25 = vsel %vm1611_vm11, %v1593_v13, %v2901_v24  ;;  %v1627_v48 = vsel %vm1611_vm11, %v1594_v5, %v2902_v12  ;;  %v1659_v8 = vpack.c.bf16 %v1643_v54, %v1642_v4 }
 0x1ae   : > { %v1651_v62 = vpack.c.bf16 %v1627_v48, %v1626_v25 }
 0x1af   : > { %2208 = vmatmul.mubr.msk.bf16.gmra.mrb[12].mxu1 %vm1687_vm12, %v1659_v8 }
 0x1b0   : > { %2192 = vmatmul.mubr.msk.bf16.gmra.mrb[12].mxu0 %vm1687_vm12, %v1651_v62 }
 0x20a   : > { %v2181_v6 = vpop.f32.mrb[0].mxu0 }
 0x20b   : > { %v1783_v30 = vadd.f32 %v2181_v6, %v4431_v1  ;;  %v1774_v15 = vpop.f32.mrb[1].mxu0 }
 0x20c   : > { %v1775_v33 = vadd.f32 %v4431_v1, %v1774_v15  ;;  %v2182_v2 = vpop.f32.mrb[2].mxu0 }
 0x20d   : > { %v1903_v58 = vmax.f32 %v1783_v30, 0.0  ;;  %v1786_v0 = vadd.f32 %v2182_v2, %v4431_v1  ;;  %v1777_v3 = vpop.f32.mrb[3].mxu0 }
 0x20e   : > { %v1901_v51 = vmax.f32 %v1775_v33, 0.0  ;;  %v1778_v14 = vadd.f32 %v4431_v1, %v1777_v3 }
 0x20f   : > { %1935 = vst [vmem:[%s4439_s29 + $0x10] sm:$0xff] %v1903_v58  ;;  %v1904_v56 = vmax.f32 %v1786_v0, 0.0  ;;  %v2197_v49 = vpop.f32.mrb[0].mxu1 }
 0x210   : > { %1933 = vst [vmem:[%s4439_s29] sm:$0xff] %v1901_v51  ;;  %v1902_v23 = vmax.f32 %v1778_v14, 0.0  ;;  %v1847_v40 = vadd.f32 %v2197_v49, %v4431_v1  ;;  %v1838_v53 = vpop.f32.mrb[1].mxu1 }
 0x211   : > { %1936 = vst [vmem:[%s4439_s29 + $0x18] sm:$0xff] %v1904_v56  ;;  %v1839_v20 = vadd.f32 %v4431_v1, %v1838_v53  ;;  %v2198_v31 = vpop.f32.mrb[2].mxu1 }
 0x212   : > { %1934 = vst [vmem:[%s4439_s29 + $0x8] sm:$0xff] %v1902_v23  ;;  %v1919_v61 = vmax.f32 %v1847_v40, 0.0  ;;  %v1850_v7 = vadd.f32 %v2198_v31, %v4431_v1  ;;  %v1841_v52 = vpop.f32.mrb[3].mxu1 }
 0x213   : > { %v1917_v39 = vmax.f32 %v1839_v20, 0.0  ;;  %v1842_v29 = vadd.f32 %v4431_v1, %v1841_v52 }
 0x214   : > { %1951 = vst [vmem:[%s4439_s29 + $0x90] sm:$0xff] %v1919_v61  ;;  %v1920_v32 = vmax.f32 %v1850_v7, 0.0 }
 0x215   : > { %1949 = vst [vmem:[%s4439_s29 + $0x80] sm:$0xff] %v1917_v39  ;;  %v1918_v35 = vmax.f32 %v1842_v29, 0.0 }
 0x216   : > { %1952 = vst [vmem:[%s4439_s29 + $0x98] sm:$0xff] %v1920_v32 }
 0x217   : > { %1950 = vst [vmem:[%s4439_s29 + $0x88] sm:$0xff] %v1918_v35 }
 0x232   : > { %v2201_v63 = vpop.f32.mrb[4].mxu1 }
 0x233   : > { %v2185_v19 = vpop.f32.mrb[4].mxu0  ;;  %v1863_v45 = vadd.f32 %v2201_v63, %v4431_v1  ;;  %v1854_v57 = vpop.f32.mrb[5].mxu1 }
 0x234   : > { %v1799_v47 = vadd.f32 %v2185_v19, %v4431_v1  ;;  %v1790_v34 = vpop.f32.mrb[5].mxu0  ;;  %v1855_v22 = vadd.f32 %v4431_v1, %v1854_v57  ;;  %v2202_v60 = vpop.f32.mrb[6].mxu1 }
 0x235   : > { %v1923_v44 = vmax.f32 %v1863_v45, 0.0  ;;  %v1791_v21 = vadd.f32 %v4431_v1, %v1790_v34  ;;  %v2186_v26 = vpop.f32.mrb[6].mxu0  ;;  %v1866_v55 = vadd.f32 %v2202_v60, %v4431_v1  ;;  %v1857_v37 = vpop.f32.mrb[7].mxu1 }
 0x236   : > { %v1907_v46 = vmax.f32 %v1799_v47, 0.0  ;;  %v1921_v59 = vmax.f32 %v1855_v22, 0.0  ;;  %v1802_v36 = vadd.f32 %v2186_v26, %v4431_v1  ;;  %v1793_v17 = vpop.f32.mrb[7].mxu0  ;;  %v1858_v16 = vadd.f32 %v4431_v1, %v1857_v37 }
 0x237   : > { %1955 = vst [vmem:[%s4439_s29 + $0xb0] sm:$0xff] %v1923_v44  ;;  %v1905_v41 = vmax.f32 %v1791_v21, 0.0  ;;  %v1924_v9 = vmax.f32 %v1866_v55, 0.0  ;;  %v1794_v50 = vadd.f32 %v4431_v1, %v1793_v17 }
 0x238   : > { %1939 = vst [vmem:[%s4439_s29 + $0x30] sm:$0xff] %v1907_v46  ;;  %1953 = vst [vmem:[%s4439_s29 + $0xa0] sm:$0xff] %v1921_v59  ;;  %v1908_v11 = vmax.f32 %v1802_v36, 0.0  ;;  %v1922_v42 = vmax.f32 %v1858_v16, 0.0 }
 0x239   : > { %1937 = vst [vmem:[%s4439_s29 + $0x20] sm:$0xff] %v1905_v41  ;;  %1956 = vst [vmem:[%s4439_s29 + $0xb8] sm:$0xff] %v1924_v9  ;;  %v1906_v10 = vmax.f32 %v1794_v50, 0.0 }
 0x23a   : > { %1940 = vst [vmem:[%s4439_s29 + $0x38] sm:$0xff] %v1908_v11  ;;  %1954 = vst [vmem:[%s4439_s29 + $0xa8] sm:$0xff] %v1922_v42 }
 0x23b   : > { %1938 = vst [vmem:[%s4439_s29 + $0x28] sm:$0xff] %v1906_v10 }
 0x25a   : > { %v2205_v18 = vpop.f32.mrb[8].mxu1 }
 0x25b   : > { %v2189_v38 = vpop.f32.mrb[8].mxu0  ;;  %v1879_v43 = vadd.f32 %v2205_v18, %v4431_v1  ;;  %v1870_v28 = vpop.f32.mrb[9].mxu1 }
 0x25c   : > { %v1815_v27 = vadd.f32 %v2189_v38, %v4431_v1  ;;  %v1806_v12 = vpop.f32.mrb[9].mxu0  ;;  %v1871_v24 = vadd.f32 %v4431_v1, %v1870_v28  ;;  %v2206_v13 = vpop.f32.mrb[10].mxu1 }
 0x25d   : > { %v1927_v5 = vmax.f32 %v1879_v43, 0.0  ;;  %v1807_v4 = vadd.f32 %v4431_v1, %v1806_v12  ;;  %v2190_v54 = vpop.f32.mrb[10].mxu0  ;;  %v1882_v25 = vadd.f32 %v2206_v13, %v4431_v1  ;;  %v1873_v48 = vpop.f32.mrb[11].mxu1 }
 0x25e   : > { %v1911_v8 = vmax.f32 %v1815_v27, 0.0  ;;  %v1925_v62 = vmax.f32 %v1871_v24, 0.0  ;;  %v1818_v6 = vadd.f32 %v2190_v54, %v4431_v1  ;;  %v1809_v30 = vpop.f32.mrb[11].mxu0  ;;  %v1874_v15 = vadd.f32 %v4431_v1, %v1873_v48 }
 0x25f   : > { %1959 = vst [vmem:[%s4439_s29 + $0xd0] sm:$0xff] %v1927_v5  ;;  %v1909_v33 = vmax.f32 %v1807_v4, 0.0  ;;  %v1928_v2 = vmax.f32 %v1882_v25, 0.0  ;;  %v1810_v58 = vadd.f32 %v4431_v1, %v1809_v30 }
 0x260   : > { %1943 = vst [vmem:[%s4439_s29 + $0x50] sm:$0xff] %v1911_v8  ;;  %1957 = vst [vmem:[%s4439_s29 + $0xc0] sm:$0xff] %v1925_v62  ;;  %v1912_v0 = vmax.f32 %v1818_v6, 0.0  ;;  %v1926_v3 = vmax.f32 %v1874_v15, 0.0 }
 0x261   : > { %1941 = vst [vmem:[%s4439_s29 + $0x40] sm:$0xff] %v1909_v33  ;;  %1960 = vst [vmem:[%s4439_s29 + $0xd8] sm:$0xff] %v1928_v2  ;;  %v1910_v51 = vmax.f32 %v1810_v58, 0.0 }
 0x262   : > { %1944 = vst [vmem:[%s4439_s29 + $0x58] sm:$0xff] %v1912_v0  ;;  %1958 = vst [vmem:[%s4439_s29 + $0xc8] sm:$0xff] %v1926_v3 }
 0x263   : > { %1942 = vst [vmem:[%s4439_s29 + $0x48] sm:$0xff] %v1910_v51 }
 0x282   : > { %v2209_v14 = vpop.f32.mrb[12].mxu1 }
 0x283   : > { %v2193_v56 = vpop.f32.mrb[12].mxu0  ;;  %v1895_v49 = vadd.f32 %v2209_v14, %v4431_v1  ;;  %v1886_v23 = vpop.f32.mrb[13].mxu1 }
 0x284   : > { %v1831_v40 = vadd.f32 %v2193_v56, %v4431_v1  ;;  %v1822_v53 = vpop.f32.mrb[13].mxu0  ;;  %v1887_v20 = vadd.f32 %v4431_v1, %v1886_v23  ;;  %v2210_v31 = vpop.f32.mrb[14].mxu1 }
 0x285   : > { %v1931_v61 = vmax.f32 %v1895_v49, 0.0  ;;  %v1823_v7 = vadd.f32 %v4431_v1, %v1822_v53  ;;  %v2194_v52 = vpop.f32.mrb[14].mxu0  ;;  %v1898_v39 = vadd.f32 %v2210_v31, %v4431_v1  ;;  %v1889_v29 = vpop.f32.mrb[15].mxu1 }
 0x286   : > { %v1915_v32 = vmax.f32 %v1831_v40, 0.0  ;;  %v1929_v35 = vmax.f32 %v1887_v20, 0.0  ;;  %v1834_v63 = vadd.f32 %v2194_v52, %v4431_v1  ;;  %v1825_v19 = vpop.f32.mrb[15].mxu0  ;;  %v1890_v45 = vadd.f32 %v4431_v1, %v1889_v29 }
 0x287   : > { %1963 = vst [vmem:[%s4439_s29 + $0xf0] sm:$0xff] %v1931_v61  ;;  %v1913_v57 = vmax.f32 %v1823_v7, 0.0  ;;  %v1932_v47 = vmax.f32 %v1898_v39, 0.0  ;;  %v1826_v34 = vadd.f32 %v4431_v1, %v1825_v19 }
 0x288   : > { %1947 = vst [vmem:[%s4439_s29 + $0x70] sm:$0xff] %v1915_v32  ;;  %1961 = vst [vmem:[%s4439_s29 + $0xe0] sm:$0xff] %v1929_v35  ;;  %v1916_v22 = vmax.f32 %v1834_v63, 0.0  ;;  %v1930_v60 = vmax.f32 %v1890_v45, 0.0 }
 0x289   : > { %1945 = vst [vmem:[%s4439_s29 + $0x60] sm:$0xff] %v1913_v57  ;;  %1964 = vst [vmem:[%s4439_s29 + $0xf8] sm:$0xff] %v1932_v47  ;;  %v1914_v44 = vmax.f32 %v1826_v34, 0.0 }
 0x28a   : > { %1948 = vst [vmem:[%s4439_s29 + $0x78] sm:$0xff] %v1916_v22  ;;  %1962 = vst [vmem:[%s4439_s29 + $0xe8] sm:$0xff] %v1930_v60 }
 0x28b   : > { %1946 = vst [vmem:[%s4439_s29 + $0x68] sm:$0xff] %v1914_v44 }
 0x28c   : > { %2950 = shalt.err (!%p2947_p3)
}
 0x28d   : > { %s2951_s19 = scalar_lea.hbm %s4501_s7, 4096  ;;  %s2955_s25 = scalar_lea.hbm %s4557_s3, 8192 }
 0x28e   : > { %p2952_p4 = scmp.ne.s32.totalorder %s4501_s7, %s2951_s19  ;;  %p2956_p9 = scmp.lt.u32.totalorder %s4501_s7, %s4557_s3 }
 0x28f   : > { %p2957_p10 = scmp.lt.u32.totalorder %s2955_s25, %s2951_s19  ;;  %p2959_p12 = scmp.lt.u32.totalorder %s2951_s19, %s4501_s7 }
 0x290   : > { %p2953_p7 = pnand %p2952_p4, %p3070_p5 }
 0x291   : > { %p2958_p11 = por %p2957_p10, %p2956_p9 }
 0x292   : > { %p2954_p8 = pneg %p2953_p7 }
 0x293   : > { %p2960_p13 = por %p2959_p12, %p2958_p11 }
 0x295   : > { %p2961_p0 = pnand %p2960_p13, %p2954_p8 }
 0x297   : > { %2964 = shalt.err (!%p2961_p0)
}
 0x298   : > { %s3011_s28 = smov 128  }
 0x299   : > { %2219 = dma.vmem_to_hbm [thread:$0]  (%p3070_p5), %s4505_s5, 4096, %s4501_s7, %s4512_s8, %s3011_s28, %s3011_s28, %s3003_s30  }
 0x29a PF: > { %p2225_p1 = scmp.ge.s32.totalorder %s2999_s15, 2  ;;  %s1994_s29 = sand.u32 1, %s2987_s12  }
 0x29b   : > { %s1995_s4 = scalar_lea.sflag [#allocation4], %s1994_s29 }
 0x29c   : > { %p2222_p2 = pnand %p2225_p1, %p3074_p6 }
 0x29e   : > { %2982 = dma.done.wait (!%p2222_p2), %s1995_s4, 4096  }
 0x29f   : > { %2984 = vsyncadd (!%p2222_p2), %s1995_s4, 4294963200  ;;  %p13_p3 = scmp.ge.s32.totalorder %s3057_s18, 4   ;;  %s4678_s12 = smov %s2991_s13 }
 0x2a0   : > { %s4679_s13 = smov %s2995_s14  ;;  %s4680_s14 = smov %s3068_s21 }
 0x2a1   : > { %s4681_s15 = smov %s3057_s18  ;;  %15 = sbr.rel (!%p13_p3) target bundleno = 3 (0x3), region = 68 }
 0x2a8   :  { %2000 = vsyncpa [#allocation4], 1 }
 0x2a9   :  { %2002 = vsyncpa [#allocation4 + $0x1], 1 }

</bundles_post_ra>
